<compile_context>
chip_gen: v7x
topology: tpu7x:2x2x1
jax: 0.10.0
libtpu: 0.0.40
codegen_flags: <defaults>
</compile_context>

<pallas_src>
import math

import jax
import jax.numpy as jnp
from jax.experimental import pallas as pl
from jax.experimental.pallas import tpu as pltpu

# ----------------- small synthetic configuration -----------------
B = 2            # batch
T = 64           # spectrogram time frames
F = 16           # mel bins
PT, PF = 8, 8    # patch size (time, freq)
D = 128          # embed dim (128-multiple so lanes are dense; real: 768)
H = 4            # attention heads       (real: 12)
DH = D // H      # head dim (= 32)
FFN = 256        # feed-forward dim      (real: 3072)
L = 2            # transformer layers    (real: 12)
POOL = 8         # AvgPool1d(8, 8) over the sequence axis

S = (T // PT) * (F // PF)    # patches per batch element (= 16)
P = PT * PF                  # flattened patch dim       (= 64)
S_OUT = S // POOL            # pooled sequence length    (= 2)


def _gelu(x):
    # TODO(synk): PyTorch nn.GELU default is exact erf; tanh approximation is
    # used here for Mosaic-safe lowering (difference is ~1e-3 relative).
    return 0.5 * x * (1.0 + jnp.tanh(0.7978845608028654 * (x + 0.044715 * x * x * x)))


def _layernorm(x, g, b, eps=1e-5):
    # E[x^2] - E[x]^2: two independent cross-lane reductions, no serialized
    # center pass.
    mu = jnp.mean(x, axis=-1, keepdims=True)
    ms = jnp.mean(x * x, axis=-1, keepdims=True)
    var = ms - mu * mu
    return (x - mu) * jax.lax.rsqrt(var + eps) * g + b


def _layernorm_ref(x, g, b, eps=1e-5):
    mu = jnp.mean(x, axis=-1, keepdims=True)
    var = jnp.mean((x - mu) ** 2, axis=-1, keepdims=True)
    return (x - mu) * jax.lax.rsqrt(var + eps) * g + b


# ----------------------------- kernel -----------------------------
def mae_ast_kernel(patches_ref, pos_ref,
                   wp_ref, bp_ref,
                   wqkv_ref, bqkv_ref, wo_ref, bo_ref,
                   ln1g_ref, ln1b_ref,
                   w1_ref, b1_ref, w2_ref, b2_ref,
                   ln2g_ref, ln2b_ref,
                   out_ref, x_ref):
    bf16 = jnp.bfloat16
    l = pl.program_id(1)           # layer grid axis ("arbitrary")

    # ---- first layer step only: patch embedding + positional embedding ----
    @pl.when(l == 0)
    def _():
        x0 = jnp.dot(patches_ref[...].astype(bf16), wp_ref[...],
                     preferred_element_type=jnp.float32) + bp_ref[...]
        x_ref[...] = x0 + pos_ref[...]                       # (S, D) f32

    x = x_ref[...]                                           # (S, D) f32

    # ---- fused QKV projection: one wide (D, 3D) matmul ----
    qkv = jnp.dot(x.astype(bf16), wqkv_ref[0],
                  preferred_element_type=jnp.float32) + bqkv_ref[0]   # (S, 3D)

    # Move heads to a leading batch axis once per layer (no per-head sub-128
    # lane slices inside the attention core).
    q = jnp.transpose(qkv[:, 0 * D:1 * D].reshape(S, H, DH), (1, 0, 2))  # (H,S,DH)
    k = jnp.transpose(qkv[:, 1 * D:2 * D].reshape(S, H, DH), (1, 0, 2))
    v = jnp.transpose(qkv[:, 2 * D:3 * D].reshape(S, H, DH), (1, 0, 2))

    scale = 1.0 / math.sqrt(DH)
    # padding_mask of the reference module is all-False -> no additive mask,
    # and per-batch attention needs no cross-batch masking at all.
    s = jnp.einsum('hqd,hkd->hqk', q.astype(bf16), k.astype(bf16),
                   preferred_element_type=jnp.float32) * scale          # (H,S,S)
    s = s - jnp.max(s, axis=-1, keepdims=True)
    p = jnp.exp(s)
    p = p * pl.reciprocal(jnp.sum(p, axis=-1, keepdims=True), approx=True)
    o = jnp.einsum('hqk,hkd->hqd', p.astype(bf16), v.astype(bf16),
                   preferred_element_type=jnp.float32)                  # (H,S,DH)

    # Head concat is a reshape; ONE output-projection matmul with K = D.
    o = jnp.transpose(o, (1, 0, 2)).reshape(S, D)
    attn = jnp.dot(o.astype(bf16), wo_ref[0],
                   preferred_element_type=jnp.float32) + bo_ref[0]

    x = _layernorm(x + attn, ln1g_ref[0], ln1b_ref[0])                  # post-LN

    hdn = _gelu(jnp.dot(x.astype(bf16), w1_ref[0],
                        preferred_element_type=jnp.float32) + b1_ref[0])
    hdn = jnp.dot(hdn.astype(bf16), w2_ref[0],
                  preferred_element_type=jnp.float32) + b2_ref[0]
    x = _layernorm(x + hdn, ln2g_ref[0], ln2b_ref[0])
    x_ref[...] = x

    # ---- last layer step only: AvgPool1d(8, 8) along sequence + store ----
    @pl.when(l == L - 1)
    def _():
        pooled = jnp.mean(x.reshape(S_OUT, POOL, D), axis=1)
        out_ref[0] = pooled.astype(out_ref.dtype)


# ----------------------------- glue -----------------------------
def extract_patches(x):
    """(B, T, F) -> (B, S, PT*PF), non-overlapping patches, time-major order."""
    b, t, f = x.shape
    x = x.reshape(b, t // PT, PT, f // PF, PF)
    x = x.transpose(0, 1, 3, 2, 4)                 # (B, nT, nF, PT, PF)
    return x.reshape(b, (t // PT) * (f // PF), PT * PF)


def sinusoidal_pos(s, d):
    pos = jnp.arange(s, dtype=jnp.float32)[:, None]
    i = jnp.arange(d // 2, dtype=jnp.float32)[None, :]
    angle = pos / jnp.power(10000.0, 2.0 * i / d)
    return jnp.concatenate([jnp.sin(angle), jnp.cos(angle)], axis=-1)


def make_params(key):
    ks = jax.random.split(key, 16)

    def nrm(k, shape, scale=0.02):
        return scale * jax.random.normal(k, shape, dtype=jnp.float32)

    return dict(
        wp=nrm(ks[0], (P, D)),        bp=nrm(ks[1], (1, D)),
        wq=nrm(ks[2], (L, D, D)),     bq=nrm(ks[3], (L, 1, D)),
        wk=nrm(ks[4], (L, D, D)),     bk=nrm(ks[5], (L, 1, D)),
        wv=nrm(ks[6], (L, D, D)),     bv=nrm(ks[7], (L, 1, D)),
        wo=nrm(ks[8], (L, D, D)),     bo=nrm(ks[9], (L, 1, D)),
        ln1g=jnp.ones((L, 1, D), jnp.float32),
        ln1b=jnp.zeros((L, 1, D), jnp.float32),
        w1=nrm(ks[10], (L, D, FFN)),  b1=nrm(ks[11], (L, 1, FFN)),
        w2=nrm(ks[12], (L, FFN, D)),  b2=nrm(ks[13], (L, 1, D)),
        ln2g=jnp.ones((L, 1, D), jnp.float32),
        ln2b=jnp.zeros((L, 1, D), jnp.float32),
    )


def mae_ast_forward(source, params):
    """Full MAE_AST.forward: source (B, T, F) -> pooled features (B, S//8, D)."""
    bf16 = jnp.bfloat16

    patches = extract_patches(source).reshape(B * S, P)      # (B*S, P)
    pos = sinusoidal_pos(S, D)                               # (S, D)

    # Fuse Q/K/V weights into one (L, D, 3D) tensor; matmul weights in bf16.
    wqkv = jnp.concatenate([params["wq"], params["wk"], params["wv"]],
                           axis=-1).astype(bf16)             # (L, D, 3D)
    bqkv = jnp.concatenate([params["bq"], params["bk"], params["bv"]],
                           axis=-1)                          # (L, 1, 3D) f32

    args = [
        patches, pos,
        params["wp"].astype(bf16), params["bp"],
        wqkv, bqkv,
        params["wo"].astype(bf16), params["bo"],
        params["ln1g"], params["ln1b"],
        params["w1"].astype(bf16), params["b1"],
        params["w2"].astype(bf16), params["b2"],
        params["ln2g"], params["ln2b"],
    ]

    def layer_spec(r, c):
        # per-layer weight tile, streamed (double-buffered) along the layer axis
        return pl.BlockSpec((1, r, c), lambda b, l: (l, 0, 0))

    def const_spec(shape):
        nd = len(shape)
        return pl.BlockSpec(shape, lambda b, l, nd=nd: (0,) * nd)

    in_specs = [
        pl.BlockSpec((S, P), lambda b, l: (b, 0)),   # patches: one batch block
        const_spec((S, D)),                          # pos
        const_spec((P, D)),                          # wp
        const_spec((1, D)),                          # bp
        layer_spec(D, 3 * D),                        # wqkv
        layer_spec(1, 3 * D),                        # bqkv
        layer_spec(D, D),                            # wo
        layer_spec(1, D),                            # bo
        layer_spec(1, D),                            # ln1g
        layer_spec(1, D),                            # ln1b
        layer_spec(D, FFN),                          # w1
        layer_spec(1, FFN),                          # b1
        layer_spec(FFN, D),                          # w2
        layer_spec(1, D),                            # b2
        layer_spec(1, D),                            # ln2g
        layer_spec(1, D),                            # ln2b
    ]
    out_specs = pl.BlockSpec((1, S_OUT, D), lambda b, l: (b, 0, 0))

    fn = pl.pallas_call(
        mae_ast_kernel,
        out_shape=jax.ShapeDtypeStruct((B, S_OUT, D), jnp.float32),
        grid=(B, L),                                  # batch parallel, layers streamed
        in_specs=in_specs,
        out_specs=out_specs,
        scratch_shapes=[pltpu.VMEM((S, D), jnp.float32)],   # activations carried over layers
        compiler_params=pltpu.CompilerParams(
            dimension_semantics=("parallel", "arbitrary"),
            # explicit cap, safely under v7x's 64 MiB physical VMEM
            # (actual usage at these synthetic sizes is < 2 MiB).
            vmem_limit_bytes=48 * 1024 * 1024),
    )
    return fn(*args)


# ------------------------ pure-JAX reference ------------------------
def ref_forward_single(patches_b, pos, p):
    x = patches_b @ p["wp"] + p["bp"]
    x = x + pos
    scale = 1.0 / math.sqrt(DH)
    for l in range(L):
        q = x @ p["wq"][l] + p["bq"][l]
        k = x @ p["wk"][l] + p["bk"][l]
        v = x @ p["wv"][l] + p["bv"][l]
        heads = []
        for h in range(H):
            sl = slice(h * DH, (h + 1) * DH)
            s = (q[:, sl] @ k[:, sl].T) * scale
            s = s - jnp.max(s, axis=-1, keepdims=True)
            a = jnp.exp(s)
            a = a / jnp.sum(a, axis=-1, keepdims=True)
            heads.append(a @ v[:, sl])
        attn = jnp.concatenate(heads, axis=-1) @ p["wo"][l] + p["bo"][l]
        x = _layernorm_ref(x + attn, p["ln1g"][l], p["ln1b"][l])
        hdn = _gelu(x @ p["w1"][l] + p["b1"][l]) @ p["w2"][l] + p["b2"][l]
        x = _layernorm_ref(x + hdn, p["ln2g"][l], p["ln2b"][l])
    return x.reshape(S_OUT, POOL, D).mean(axis=1)


if __name__ == "__main__":
    key = jax.random.PRNGKey(0)
    k_src, k_par = jax.random.split(key)
    source = jax.random.normal(k_src, (B, T, F), dtype=jnp.float32)
    params = make_params(k_par)

    out = mae_ast_forward(source, params)
    out = jax.block_until_ready(out)
    assert out.shape == (B, S_OUT, D), out.shape
    assert bool(jnp.all(jnp.isfinite(out)))

    # correctness check against a pure-JAX f32 reference
    patches = extract_patches(source)
    pos = sinusoidal_pos(S, D)
    ref = jnp.stack([ref_forward_single(patches[b], pos, params)
                     for b in range(B)], axis=0)
    err = float(jnp.max(jnp.abs(out - ref)))
    assert jnp.allclose(out, ref, atol=5e-2, rtol=5e-2), f"max abs err {err}"

    print("KERNEL_OK")
</pallas_src>

<mosaic_0001>
module attributes {stable_mosaic.version = 11 : i64} {
  func.func @mae_ast_kernel(%arg0: i32, %arg1: i32, %arg2: memref<16x64xf32, #tpu.memory_space<vmem>>, %arg3: memref<16x128xf32, #tpu.memory_space<vmem>>, %arg4: memref<64x128xbf16, #tpu.memory_space<vmem>>, %arg5: memref<1x128xf32, #tpu.memory_space<vmem>>, %arg6: memref<1x128x384xbf16, #tpu.memory_space<vmem>>, %arg7: memref<1x1x384xf32, #tpu.memory_space<vmem>>, %arg8: memref<1x128x128xbf16, #tpu.memory_space<vmem>>, %arg9: memref<1x1x128xf32, #tpu.memory_space<vmem>>, %arg10: memref<1x1x128xf32, #tpu.memory_space<vmem>>, %arg11: memref<1x1x128xf32, #tpu.memory_space<vmem>>, %arg12: memref<1x128x256xbf16, #tpu.memory_space<vmem>>, %arg13: memref<1x1x256xf32, #tpu.memory_space<vmem>>, %arg14: memref<1x256x128xbf16, #tpu.memory_space<vmem>>, %arg15: memref<1x1x128xf32, #tpu.memory_space<vmem>>, %arg16: memref<1x1x128xf32, #tpu.memory_space<vmem>>, %arg17: memref<1x1x128xf32, #tpu.memory_space<vmem>>, %arg18: memref<1x2x128xf32, #tpu.memory_space<vmem>>, %arg19: memref<16x128xf32, #tpu.memory_space<vmem>>) attributes {dimension_semantics = [#tpu.dimension_semantics<parallel>, #tpu.dimension_semantics<arbitrary>], iteration_bounds = array<i64: 2, 2>, scalar_prefetch = 0 : i64, scratch_operands = 1 : i64, tpu.core_type = #tpu.core_type<tc>, window_params = [{transform_indices = @transform_0, window_bounds = array<i64: 16, 64>}, {pipeline_mode = #tpu.pipeline_mode<synchronous>, transform_indices = @transform_1, window_bounds = array<i64: 16, 128>}, {pipeline_mode = #tpu.pipeline_mode<synchronous>, transform_indices = @transform_2, window_bounds = array<i64: 64, 128>}, {pipeline_mode = #tpu.pipeline_mode<synchronous>, transform_indices = @transform_3, window_bounds = array<i64: 1, 128>}, {transform_indices = @transform_4, window_bounds = array<i64: 1, 128, 384>}, {transform_indices = @transform_5, window_bounds = array<i64: 1, 1, 384>}, {transform_indices = @transform_6, window_bounds = array<i64: 1, 128, 128>}, {transform_indices = @transform_7, window_bounds = array<i64: 1, 1, 128>}, {transform_indices = @transform_8, window_bounds = array<i64: 1, 1, 128>}, {transform_indices = @transform_9, window_bounds = array<i64: 1, 1, 128>}, {transform_indices = @transform_10, window_bounds = array<i64: 1, 128, 256>}, {transform_indices = @transform_11, window_bounds = array<i64: 1, 1, 256>}, {transform_indices = @transform_12, window_bounds = array<i64: 1, 256, 128>}, {transform_indices = @transform_13, window_bounds = array<i64: 1, 1, 128>}, {transform_indices = @transform_14, window_bounds = array<i64: 1, 1, 128>}, {transform_indices = @transform_15, window_bounds = array<i64: 1, 1, 128>}, {transform_indices = @transform_16, window_bounds = array<i64: 1, 2, 128>}]} {
    %c0_i32 = arith.constant 0 : i32
    %0 = arith.cmpi eq, %arg1, %c0_i32 : i32
    %1 = arith.extui %0 : i1 to i32
    %c0_i32_0 = arith.constant 0 : i32
    %2 = arith.cmpi ne, %1, %c0_i32_0 : i32
    scf.if %2 {
      %c0_63 = arith.constant 0 : index
      %c0_64 = arith.constant 0 : index
      %136 = vector.load %arg2[%c0_63, %c0_64] : memref<16x64xf32, #tpu.memory_space<vmem>>, vector<16x64xf32>
      %137 = arith.truncf %136 : vector<16x64xf32> to vector<16x64xbf16>
      %c0_65 = arith.constant 0 : index
      %c0_66 = arith.constant 0 : index
      %138 = vector.load %arg4[%c0_65, %c0_66] : memref<64x128xbf16, #tpu.memory_space<vmem>>, vector<64x128xbf16>
      %cst_67 = arith.constant dense<0.000000e+00> : vector<16x128xf32>
      %139 = tpu.matmul %137, %138, %cst_67 {dimension_numbers = #tpu.dot_dimension_numbers<[1], [0], [0], [1], [0, 0, 1, 1], [], []>} : vector<16x64xbf16>, vector<64x128xbf16>, vector<16x128xf32> -> vector<16x128xf32>
      %c0_68 = arith.constant 0 : index
      %c0_69 = arith.constant 0 : index
      %140 = vector.load %arg5[%c0_68, %c0_69] : memref<1x128xf32, #tpu.memory_space<vmem>>, vector<1x128xf32>
      %141 = vector.broadcast %140 : vector<1x128xf32> to vector<16x128xf32>
      %142 = arith.addf %139, %141 : vector<16x128xf32>
      %c0_70 = arith.constant 0 : index
      %c0_71 = arith.constant 0 : index
      %143 = vector.load %arg3[%c0_70, %c0_71] : memref<16x128xf32, #tpu.memory_space<vmem>>, vector<16x128xf32>
      %144 = arith.addf %142, %143 : vector<16x128xf32>
      %c0_72 = arith.constant 0 : index
      %c0_73 = arith.constant 0 : index
      %145 = vector.load %arg19[%c0_72, %c0_73] : memref<16x128xf32, #tpu.memory_space<vmem>>, vector<16x128xf32>
      tpu.vector_store %arg19[%c0_72, %c0_73], %144 {strides = array<i32>} : memref<16x128xf32, #tpu.memory_space<vmem>>, vector<16x128xf32>,
    } else {
    }
    %c0 = arith.constant 0 : index
    %c0_1 = arith.constant 0 : index
    %3 = vector.load %arg19[%c0, %c0_1] : memref<16x128xf32, #tpu.memory_space<vmem>>, vector<16x128xf32>
    %4 = arith.truncf %3 : vector<16x128xf32> to vector<16x128xbf16>
    %c0_2 = arith.constant 0 : index
    %c0_3 = arith.constant 0 : index
    %c0_4 = arith.constant 0 : index
    %5 = vector.load %arg6[%c0_2, %c0_3, %c0_4] : memref<1x128x384xbf16, #tpu.memory_space<vmem>>, vector<1x128x384xbf16>
    %6 = vector.shape_cast %5 : vector<1x128x384xbf16> to vector<128x384xbf16>
    %cst = arith.constant dense<0.000000e+00> : vector<16x384xf32>
    %7 = tpu.matmul %4, %6, %cst {dimension_numbers = #tpu.dot_dimension_numbers<[1], [0], [0], [1], [0, 0, 1, 1], [], []>} : vector<16x128xbf16>, vector<128x384xbf16>, vector<16x384xf32> -> vector<16x384xf32>
    %c0_5 = arith.constant 0 : index
    %c0_6 = arith.constant 0 : index
    %c0_7 = arith.constant 0 : index
    %8 = vector.load %arg7[%c0_5, %c0_6, %c0_7] : memref<1x1x384xf32, #tpu.memory_space<vmem>>, vector<1x1x384xf32>
    %9 = vector.shape_cast %8 : vector<1x1x384xf32> to vector<1x384xf32>
    %10 = vector.broadcast %9 : vector<1x384xf32> to vector<16x384xf32>
    %11 = arith.addf %7, %10 : vector<16x384xf32>
    %12 = vector.extract_strided_slice %11 {offsets = [0, 0], sizes = [16, 128], strides = [1, 1]} : vector<16x384xf32> to vector<16x128xf32>
    %13 = vector.shape_cast %12 : vector<16x128xf32> to vector<16x4x32xf32>
    %14 = tpu.transpose %13, [1, 0, 2] : vector<16x4x32xf32> -> vector<4x16x32xf32>
    %15 = vector.extract_strided_slice %11 {offsets = [0, 128], sizes = [16, 128], strides = [1, 1]} : vector<16x384xf32> to vector<16x128xf32>
    %16 = vector.shape_cast %15 : vector<16x128xf32> to vector<16x4x32xf32>
    %17 = tpu.transpose %16, [1, 0, 2] : vector<16x4x32xf32> -> vector<4x16x32xf32>
    %18 = vector.extract_strided_slice %11 {offsets = [0, 256], sizes = [16, 128], strides = [1, 1]} : vector<16x384xf32> to vector<16x128xf32>
    %19 = vector.shape_cast %18 : vector<16x128xf32> to vector<16x4x32xf32>
    %20 = tpu.transpose %19, [1, 0, 2] : vector<16x4x32xf32> -> vector<4x16x32xf32>
    %21 = arith.truncf %14 : vector<4x16x32xf32> to vector<4x16x32xbf16>
    %22 = arith.truncf %17 : vector<4x16x32xf32> to vector<4x16x32xbf16>
    "tpu.trace_start"() <{level = 10 : i32, message = "hqd,hkd->hqk"}> : () -> ()
    %cst_8 = arith.constant dense<0.000000e+00> : vector<4x16x16xf32>
    %23 = tpu.matmul %21, %22, %cst_8 {dimension_numbers = #tpu.dot_dimension_numbers<[2], [2], [1], [1], [0, 0, 0, 1, 1, 1], [0], [0]>} : vector<4x16x32xbf16>, vector<4x16x32xbf16>, vector<4x16x16xf32> -> vector<4x16x16xf32>
    "tpu.trace_stop"() : () -> ()
    %cst_9 = arith.constant 0.176776692 : f32
    %24 = vector.broadcast %cst_9 : f32 to vector<4x16x16xf32>
    %25 = arith.mulf %23, %24 : vector<4x16x16xf32>
    %cst_10 = arith.constant dense<0xFF800000> : vector<4x16xf32>
    %26 = vector.multi_reduction <maximumf>, %25, %cst_10 [2] : vector<4x16x16xf32> to vector<4x16xf32>
    %27 = vector.shape_cast %26 : vector<4x16xf32> to vector<4x16x1xf32>
    %28 = vector.broadcast %27 : vector<4x16x1xf32> to vector<4x16x16xf32>
    %29 = arith.subf %25, %28 : vector<4x16x16xf32>
    %30 = math.exp %29 : vector<4x16x16xf32>
    %cst_11 = arith.constant dense<0.000000e+00> : vector<4x16xf32>
    %31 = vector.multi_reduction <add>, %30, %cst_11 [2] : vector<4x16x16xf32> to vector<4x16xf32>
    %32 = vector.shape_cast %31 : vector<4x16xf32> to vector<4x16x1xf32>
    %33 = tpu.reciprocal %32 {approx = true} : vector<4x16x1xf32> -> vector<4x16x1xf32>
    %34 = vector.broadcast %33 : vector<4x16x1xf32> to vector<4x16x16xf32>
    %35 = arith.mulf %30, %34 : vector<4x16x16xf32>
    %36 = arith.truncf %35 : vector<4x16x16xf32> to vector<4x16x16xbf16>
    %37 = arith.truncf %20 : vector<4x16x32xf32> to vector<4x16x32xbf16>
    "tpu.trace_start"() <{level = 10 : i32, message = "hqk,hkd->hqd"}> : () -> ()
    %cst_12 = arith.constant dense<0.000000e+00> : vector<4x16x32xf32>
    %38 = tpu.matmul %36, %37, %cst_12 {dimension_numbers = #tpu.dot_dimension_numbers<[2], [1], [1], [2], [0, 0, 0, 1, 1, 2], [0], [0]>} : vector<4x16x16xbf16>, vector<4x16x32xbf16>, vector<4x16x32xf32> -> vector<4x16x32xf32>
    "tpu.trace_stop"() : () -> ()
    %39 = tpu.transpose %38, [1, 0, 2] : vector<4x16x32xf32> -> vector<16x4x32xf32>
    %40 = vector.shape_cast %39 : vector<16x4x32xf32> to vector<16x128xf32>
    %41 = arith.truncf %40 : vector<16x128xf32> to vector<16x128xbf16>
    %c0_13 = arith.constant 0 : index
    %c0_14 = arith.constant 0 : index
    %c0_15 = arith.constant 0 : index
    %42 = vector.load %arg8[%c0_13, %c0_14, %c0_15] : memref<1x128x128xbf16, #tpu.memory_space<vmem>>, vector<1x128x128xbf16>
    %43 = vector.shape_cast %42 : vector<1x128x128xbf16> to vector<128x128xbf16>
    %cst_16 = arith.constant dense<0.000000e+00> : vector<16x128xf32>
    %44 = tpu.matmul %41, %43, %cst_16 {dimension_numbers = #tpu.dot_dimension_numbers<[1], [0], [0], [1], [0, 0, 1, 1], [], []>} : vector<16x128xbf16>, vector<128x128xbf16>, vector<16x128xf32> -> vector<16x128xf32>
    %c0_17 = arith.constant 0 : index
    %c0_18 = arith.constant 0 : index
    %c0_19 = arith.constant 0 : index
    %45 = vector.load %arg9[%c0_17, %c0_18, %c0_19] : memref<1x1x128xf32, #tpu.memory_space<vmem>>, vector<1x1x128xf32>
    %46 = vector.shape_cast %45 : vector<1x1x128xf32> to vector<1x128xf32>
    %47 = vector.broadcast %46 : vector<1x128xf32> to vector<16x128xf32>
    %48 = arith.addf %44, %47 : vector<16x128xf32>
    %49 = arith.addf %3, %48 : vector<16x128xf32>
    %c0_20 = arith.constant 0 : index
    %c0_21 = arith.constant 0 : index
    %c0_22 = arith.constant 0 : index
    %50 = vector.load %arg10[%c0_20, %c0_21, %c0_22] : memref<1x1x128xf32, #tpu.memory_space<vmem>>, vector<1x1x128xf32>
    %51 = vector.shape_cast %50 : vector<1x1x128xf32> to vector<1x128xf32>
    %c0_23 = arith.constant 0 : index
    %c0_24 = arith.constant 0 : index
    %c0_25 = arith.constant 0 : index
    %52 = vector.load %arg11[%c0_23, %c0_24, %c0_25] : memref<1x1x128xf32, #tpu.memory_space<vmem>>, vector<1x1x128xf32>
    %53 = vector.shape_cast %52 : vector<1x1x128xf32> to vector<1x128xf32>
    %cst_26 = arith.constant dense<0.000000e+00> : vector<16xf32>
    %54 = vector.multi_reduction <add>, %49, %cst_26 [1] : vector<16x128xf32> to vector<16xf32>
    %55 = vector.shape_cast %54 : vector<16xf32> to vector<16x1xf32>
    %cst_27 = arith.constant 1.280000e+02 : f32
    %56 = vector.broadcast %cst_27 : f32 to vector<16x1xf32>
    %57 = arith.divf %55, %56 : vector<16x1xf32>
    %58 = arith.mulf %49, %49 : vector<16x128xf32>
    %cst_28 = arith.constant dense<0.000000e+00> : vector<16xf32>
    %59 = vector.multi_reduction <add>, %58, %cst_28 [1] : vector<16x128xf32> to vector<16xf32>
    %60 = vector.shape_cast %59 : vector<16xf32> to vector<16x1xf32>
    %cst_29 = arith.constant 1.280000e+02 : f32
    %61 = vector.broadcast %cst_29 : f32 to vector<16x1xf32>
    %62 = arith.divf %60, %61 : vector<16x1xf32>
    %63 = arith.mulf %57, %57 : vector<16x1xf32>
    %64 = arith.subf %62, %63 : vector<16x1xf32>
    %65 = vector.broadcast %57 : vector<16x1xf32> to vector<16x128xf32>
    %66 = arith.subf %49, %65 : vector<16x128xf32>
    %cst_30 = arith.constant 9.99999974E-6 : f32
    %67 = vector.broadcast %cst_30 : f32 to vector<16x1xf32>
    %68 = arith.addf %64, %67 : vector<16x1xf32>
    %69 = math.rsqrt %68 : vector<16x1xf32>
    %70 = vector.broadcast %69 : vector<16x1xf32> to vector<16x128xf32>
    %71 = arith.mulf %66, %70 : vector<16x128xf32>
    %72 = vector.broadcast %51 : vector<1x128xf32> to vector<16x128xf32>
    %73 = arith.mulf %71, %72 : vector<16x128xf32>
    %74 = vector.broadcast %53 : vector<1x128xf32> to vector<16x128xf32>
    %75 = arith.addf %73, %74 : vector<16x128xf32>
    %76 = arith.truncf %75 : vector<16x128xf32> to vector<16x128xbf16>
    %c0_31 = arith.constant 0 : index
    %c0_32 = arith.constant 0 : index
    %c0_33 = arith.constant 0 : index
    %77 = vector.load %arg12[%c0_31, %c0_32, %c0_33] : memref<1x128x256xbf16, #tpu.memory_space<vmem>>, vector<1x128x256xbf16>
    %78 = vector.shape_cast %77 : vector<1x128x256xbf16> to vector<128x256xbf16>
    %cst_34 = arith.constant dense<0.000000e+00> : vector<16x256xf32>
    %79 = tpu.matmul %76, %78, %cst_34 {dimension_numbers = #tpu.dot_dimension_numbers<[1], [0], [0], [1], [0, 0, 1, 1], [], []>} : vector<16x128xbf16>, vector<128x256xbf16>, vector<16x256xf32> -> vector<16x256xf32>
    %c0_35 = arith.constant 0 : index
    %c0_36 = arith.constant 0 : index
    %c0_37 = arith.constant 0 : index
    %80 = vector.load %arg13[%c0_35, %c0_36, %c0_37] : memref<1x1x256xf32, #tpu.memory_space<vmem>>, vector<1x1x256xf32>
    %81 = vector.shape_cast %80 : vector<1x1x256xf32> to vector<1x256xf32>
    %82 = vector.broadcast %81 : vector<1x256xf32> to vector<16x256xf32>
    %83 = arith.addf %79, %82 : vector<16x256xf32>
    %cst_38 = arith.constant 5.000000e-01 : f32
    %84 = vector.broadcast %cst_38 : f32 to vector<16x256xf32>
    %85 = arith.mulf %84, %83 : vector<16x256xf32>
    %cst_39 = arith.constant 4.471500e-02 : f32
    %86 = vector.broadcast %cst_39 : f32 to vector<16x256xf32>
    %87 = arith.mulf %86, %83 : vector<16x256xf32>
    %88 = arith.mulf %87, %83 : vector<16x256xf32>
    %89 = arith.mulf %88, %83 : vector<16x256xf32>
    %90 = arith.addf %83, %89 : vector<16x256xf32>
    %cst_40 = arith.constant 0.797884583 : f32
    %91 = vector.broadcast %cst_40 : f32 to vector<16x256xf32>
    %92 = arith.mulf %91, %90 : vector<16x256xf32>
    %93 = math.tanh %92 : vector<16x256xf32>
    %cst_41 = arith.constant 1.000000e+00 : f32
    %94 = vector.broadcast %cst_41 : f32 to vector<16x256xf32>
    %95 = arith.addf %94, %93 : vector<16x256xf32>
    %96 = arith.mulf %85, %95 : vector<16x256xf32>
    %97 = arith.truncf %96 : vector<16x256xf32> to vector<16x256xbf16>
    %c0_42 = arith.constant 0 : index
    %c0_43 = arith.constant 0 : index
    %c0_44 = arith.constant 0 : index
    %98 = vector.load %arg14[%c0_42, %c0_43, %c0_44] : memref<1x256x128xbf16, #tpu.memory_space<vmem>>, vector<1x256x128xbf16>
    %99 = vector.shape_cast %98 : vector<1x256x128xbf16> to vector<256x128xbf16>
    %cst_45 = arith.constant dense<0.000000e+00> : vector<16x128xf32>
    %100 = tpu.matmul %97, %99, %cst_45 {dimension_numbers = #tpu.dot_dimension_numbers<[1], [0], [0], [1], [0, 0, 1, 1], [], []>} : vector<16x256xbf16>, vector<256x128xbf16>, vector<16x128xf32> -> vector<16x128xf32>
    %c0_46 = arith.constant 0 : index
    %c0_47 = arith.constant 0 : index
    %c0_48 = arith.constant 0 : index
    %101 = vector.load %arg15[%c0_46, %c0_47, %c0_48] : memref<1x1x128xf32, #tpu.memory_space<vmem>>, vector<1x1x128xf32>
    %102 = vector.shape_cast %101 : vector<1x1x128xf32> to vector<1x128xf32>
    %103 = vector.broadcast %102 : vector<1x128xf32> to vector<16x128xf32>
    %104 = arith.addf %100, %103 : vector<16x128xf32>
    %105 = arith.addf %75, %104 : vector<16x128xf32>
    %c0_49 = arith.constant 0 : index
    %c0_50 = arith.constant 0 : index
    %c0_51 = arith.constant 0 : index
    %106 = vector.load %arg16[%c0_49, %c0_50, %c0_51] : memref<1x1x128xf32, #tpu.memory_space<vmem>>, vector<1x1x128xf32>
    %107 = vector.shape_cast %106 : vector<1x1x128xf32> to vector<1x128xf32>
    %c0_52 = arith.constant 0 : index
    %c0_53 = arith.constant 0 : index
    %c0_54 = arith.constant 0 : index
    %108 = vector.load %arg17[%c0_52, %c0_53, %c0_54] : memref<1x1x128xf32, #tpu.memory_space<vmem>>, vector<1x1x128xf32>
    %109 = vector.shape_cast %108 : vector<1x1x128xf32> to vector<1x128xf32>
    %cst_55 = arith.constant dense<0.000000e+00> : vector<16xf32>
    %110 = vector.multi_reduction <add>, %105, %cst_55 [1] : vector<16x128xf32> to vector<16xf32>
    %111 = vector.shape_cast %110 : vector<16xf32> to vector<16x1xf32>
    %cst_56 = arith.constant 1.280000e+02 : f32
    %112 = vector.broadcast %cst_56 : f32 to vector<16x1xf32>
    %113 = arith.divf %111, %112 : vector<16x1xf32>
    %114 = arith.mulf %105, %105 : vector<16x128xf32>
    %cst_57 = arith.constant dense<0.000000e+00> : vector<16xf32>
    %115 = vector.multi_reduction <add>, %114, %cst_57 [1] : vector<16x128xf32> to vector<16xf32>
    %116 = vector.shape_cast %115 : vector<16xf32> to vector<16x1xf32>
    %cst_58 = arith.constant 1.280000e+02 : f32
    %117 = vector.broadcast %cst_58 : f32 to vector<16x1xf32>
    %118 = arith.divf %116, %117 : vector<16x1xf32>
    %119 = arith.mulf %113, %113 : vector<16x1xf32>
    %120 = arith.subf %118, %119 : vector<16x1xf32>
    %121 = vector.broadcast %113 : vector<16x1xf32> to vector<16x128xf32>
    %122 = arith.subf %105, %121 : vector<16x128xf32>
    %cst_59 = arith.constant 9.99999974E-6 : f32
    %123 = vector.broadcast %cst_59 : f32 to vector<16x1xf32>
    %124 = arith.addf %120, %123 : vector<16x1xf32>
    %125 = math.rsqrt %124 : vector<16x1xf32>
    %126 = vector.broadcast %125 : vector<16x1xf32> to vector<16x128xf32>
    %127 = arith.mulf %122, %126 : vector<16x128xf32>
    %128 = vector.broadcast %107 : vector<1x128xf32> to vector<16x128xf32>
    %129 = arith.mulf %127, %128 : vector<16x128xf32>
    %130 = vector.broadcast %109 : vector<1x128xf32> to vector<16x128xf32>
    %131 = arith.addf %129, %130 : vector<16x128xf32>
    %c0_60 = arith.constant 0 : index
    %c0_61 = arith.constant 0 : index
    %132 = vector.load %arg19[%c0_60, %c0_61] : memref<16x128xf32, #tpu.memory_space<vmem>>, vector<16x128xf32>
    tpu.vector_store %arg19[%c0_60, %c0_61], %131 {strides = array<i32>} : memref<16x128xf32, #tpu.memory_space<vmem>>, vector<16x128xf32>,
    %c1_i32 = arith.constant 1 : i32
    %133 = arith.cmpi eq, %arg1, %c1_i32 : i32
    %134 = arith.extui %133 : i1 to i32
    %c0_i32_62 = arith.constant 0 : i32
    %135 = arith.cmpi ne, %134, %c0_i32_62 : i32
    scf.if %135 {
      %136 = vector.shape_cast %131 : vector<16x128xf32> to vector<2x8x128xf32>
      %cst_63 = arith.constant dense<0.000000e+00> : vector<2x128xf32>
      %137 = vector.multi_reduction <add>, %136, %cst_63 [1] : vector<2x8x128xf32> to vector<2x128xf32>
      %cst_64 = arith.constant 8.000000e+00 : f32
      %138 = vector.broadcast %cst_64 : f32 to vector<2x128xf32>
      %139 = arith.divf %137, %138 : vector<2x128xf32>
      %c0_65 = arith.constant 0 : index
      %c0_66 = arith.constant 0 : index
      %c0_67 = arith.constant 0 : index
      %140 = vector.load %arg18[%c0_65, %c0_66, %c0_67] : memref<1x2x128xf32, #tpu.memory_space<vmem>>, vector<1x2x128xf32>
      %141 = vector.shape_cast %140 : vector<1x2x128xf32> to vector<2x128xf32>
      %142 = vector.shape_cast %139 : vector<2x128xf32> to vector<1x2x128xf32>
      tpu.vector_store %arg18[%c0_65, %c0_66, %c0_67], %142 {strides = array<i32>} : memref<1x2x128xf32, #tpu.memory_space<vmem>>, vector<1x2x128xf32>,
    } else {
    }
    return
  }
  func.func @transform_0(%arg0: i32, %arg1: i32) -> (i32, i32) {
    %c0_i32 = arith.constant 0 : i32
    %c0_i32_0 = arith.constant 0 : i32
    return %arg0, %c0_i32 : i32, i32
  }
  func.func @transform_1(%arg0: i32, %arg1: i32) -> (i32, i32) {
    %c0_i32 = arith.constant 0 : i32
    %c0_i32_0 = arith.constant 0 : i32
    %c0_i32_1 = arith.constant 0 : i32
    return %c0_i32, %c0_i32_0 : i32, i32
  }
  func.func @transform_2(%arg0: i32, %arg1: i32) -> (i32, i32) {
    %c0_i32 = arith.constant 0 : i32
    %c0_i32_0 = arith.constant 0 : i32
    %c0_i32_1 = arith.constant 0 : i32
    return %c0_i32, %c0_i32_0 : i32, i32
  }
  func.func @transform_3(%arg0: i32, %arg1: i32) -> (i32, i32) {
    %c0_i32 = arith.constant 0 : i32
    %c0_i32_0 = arith.constant 0 : i32
    %c0_i32_1 = arith.constant 0 : i32
    return %c0_i32, %c0_i32_0 : i32, i32
  }
  func.func @transform_4(%arg0: i32, %arg1: i32) -> (i32, i32, i32) {
    %c0_i32 = arith.constant 0 : i32
    %c0_i32_0 = arith.constant 0 : i32
    %c0_i32_1 = arith.constant 0 : i32
    return %arg1, %c0_i32, %c0_i32_0 : i32, i32, i32
  }
  func.func @transform_5(%arg0: i32, %arg1: i32) -> (i32, i32, i32) {
    %c0_i32 = arith.constant 0 : i32
    %c0_i32_0 = arith.constant 0 : i32
    %c0_i32_1 = arith.constant 0 : i32
    return %arg1, %c0_i32, %c0_i32_0 : i32, i32, i32
  }
  func.func @transform_6(%arg0: i32, %arg1: i32) -> (i32, i32, i32) {
    %c0_i32 = arith.constant 0 : i32
    %c0_i32_0 = arith.constant 0 : i32
    %c0_i32_1 = arith.constant 0 : i32
    return %arg1, %c0_i32, %c0_i32_0 : i32, i32, i32
  }
  func.func @transform_7(%arg0: i32, %arg1: i32) -> (i32, i32, i32) {
    %c0_i32 = arith.constant 0 : i32
    %c0_i32_0 = arith.constant 0 : i32
    %c0_i32_1 = arith.constant 0 : i32
    return %arg1, %c0_i32, %c0_i32_0 : i32, i32, i32
  }
  func.func @transform_8(%arg0: i32, %arg1: i32) -> (i32, i32, i32) {
    %c0_i32 = arith.constant 0 : i32
    %c0_i32_0 = arith.constant 0 : i32
    %c0_i32_1 = arith.constant 0 : i32
    return %arg1, %c0_i32, %c0_i32_0 : i32, i32, i32
  }
  func.func @transform_9(%arg0: i32, %arg1: i32) -> (i32, i32, i32) {
    %c0_i32 = arith.constant 0 : i32
    %c0_i32_0 = arith.constant 0 : i32
    %c0_i32_1 = arith.constant 0 : i32
    return %arg1, %c0_i32, %c0_i32_0 : i32, i32, i32
  }
  func.func @transform_10(%arg0: i32, %arg1: i32) -> (i32, i32, i32) {
    %c0_i32 = arith.constant 0 : i32
    %c0_i32_0 = arith.constant 0 : i32
    %c0_i32_1 = arith.constant 0 : i32
    return %arg1, %c0_i32, %c0_i32_0 : i32, i32, i32
  }
  func.func @transform_11(%arg0: i32, %arg1: i32) -> (i32, i32, i32) {
    %c0_i32 = arith.constant 0 : i32
    %c0_i32_0 = arith.constant 0 : i32
    %c0_i32_1 = arith.constant 0 : i32
    return %arg1, %c0_i32, %c0_i32_0 : i32, i32, i32
  }
  func.func @transform_12(%arg0: i32, %arg1: i32) -> (i32, i32, i32) {
    %c0_i32 = arith.constant 0 : i32
    %c0_i32_0 = arith.constant 0 : i32
    %c0_i32_1 = arith.constant 0 : i32
    return %arg1, %c0_i32, %c0_i32_0 : i32, i32, i32
  }
  func.func @transform_13(%arg0: i32, %arg1: i32) -> (i32, i32, i32) {
    %c0_i32 = arith.constant 0 : i32
    %c0_i32_0 = arith.constant 0 : i32
    %c0_i32_1 = arith.constant 0 : i32
    return %arg1, %c0_i32, %c0_i32_0 : i32, i32, i32
  }
  func.func @transform_14(%arg0: i32, %arg1: i32) -> (i32, i32, i32) {
    %c0_i32 = arith.constant 0 : i32
    %c0_i32_0 = arith.constant 0 : i32
    %c0_i32_1 = arith.constant 0 : i32
    return %arg1, %c0_i32, %c0_i32_0 : i32, i32, i32
  }
  func.func @transform_15(%arg0: i32, %arg1: i32) -> (i32, i32, i32) {
    %c0_i32 = arith.constant 0 : i32
    %c0_i32_0 = arith.constant 0 : i32
    %c0_i32_1 = arith.constant 0 : i32
    return %arg1, %c0_i32, %c0_i32_0 : i32, i32, i32
  }
  func.func @transform_16(%arg0: i32, %arg1: i32) -> (i32, i32, i32) {
    %c0_i32 = arith.constant 0 : i32
    %c0_i32_0 = arith.constant 0 : i32
    %c0_i32_1 = arith.constant 0 : i32
    return %arg0, %c0_i32, %c0_i32_0 : i32, i32, i32
  }
}

</mosaic_0001>

<bundles_post_ra>
// kernel: tpu_custom_call.1
= control target key start
LH: loop header
LB: loop body
LE: loop exit
PB: predicated region body
PF: predicated region fallthrough
CT: control target
= control target key end

     0   :  { %s5896_s0 = inlined_call_operand.hbm [shape: f32[32,64], index: 0, kind: input, shape index: {}]   ;;  %s5897_s1 = inlined_call_operand.hbm [shape: f32[16,128], index: 1, kind: input, shape index: {}]   ;;  %s5898_s2 = inlined_call_operand.hbm [shape: bf16[64,128], index: 2, kind: input, shape index: {}]   ;;  %s5899_s3 = inlined_call_operand.hbm [shape: f32[1,128], index: 3, kind: input, shape index: {}]   ;;  %s5900_s4 = inlined_call_operand.hbm [shape: bf16[2,128,384], index: 4, kind: input, shape index: {}]   ;;  %s5901_s5 = inlined_call_operand.vmem [shape: f32[2,1,384], index: 5, kind: input, shape index: {}]   ;;  %s5902_s6 = inlined_call_operand.hbm [shape: bf16[2,128,128], index: 6, kind: input, shape index: {}]   ;;  %s5903_s7 = inlined_call_operand.vmem [shape: f32[2,1,128], index: 7, kind: input, shape index: {}]   ;;  %s5904_s8 = inlined_call_operand.vmem [shape: f32[2,1,128], index: 8, kind: input, shape index: {}]   ;;  %s5905_s9 = inlined_call_operand.vmem [shape: f32[2,1,128], index: 9, kind: input, shape index: {}]   ;;  %s5906_s10 = inlined_call_operand.hbm [shape: bf16[2,128,256], index: 10, kind: input, shape index: {}]   ;;  %s5907_s11 = inlined_call_operand.vmem [shape: f32[2,1,256], index: 11, kind: input, shape index: {}]   ;;  %s5908_s12 = inlined_call_operand.hbm [shape: bf16[2,256,128], index: 12, kind: input, shape index: {}]   ;;  %s5909_s13 = inlined_call_operand.vmem [shape: f32[2,1,128], index: 13, kind: input, shape index: {}]   ;;  %s5910_s14 = inlined_call_operand.vmem [shape: f32[2,1,128], index: 14, kind: input, shape index: {}]   ;;  %s5911_s15 = inlined_call_operand.vmem [shape: f32[2,1,128], index: 15, kind: input, shape index: {}]   ;;  %s5912_s16 = inlined_call_operand.hbm [shape: f32[2,2,128], index: 16, kind: output, shape index: {}]  }
   0x1   :  { %5956 = sst [smem:[#allocation37_spill]] %s5896_s0 }
   0x2   :  { %5957 = sst [smem:[#allocation38_spill]] %s5897_s1 }
   0x3   :  { %5958 = sst [smem:[#allocation39_spill]] %s5898_s2 }
   0x4   :  { %5959 = sst [smem:[#allocation40_spill]] %s5899_s3 }
   0x5   :  { %5960 = sst [smem:[#allocation41_spill]] %s5900_s4 }
   0x6   :  { %5961 = sst [smem:[#allocation42_spill]] %s5901_s5 }
   0x7   :  { %5962 = sst [smem:[#allocation43_spill]] %s5902_s6 }
   0x8   :  { %5963 = sst [smem:[#allocation44_spill]] %s5903_s7 }
   0x9   :  { %5964 = sst [smem:[#allocation45_spill]] %s5904_s8 }
   0xa   :  { %5965 = sst [smem:[#allocation46_spill]] %s5905_s9 }
   0xb   :  { %5966 = sst [smem:[#allocation47_spill]] %s5906_s10 }
   0xc   :  { %5967 = sst [smem:[#allocation48_spill]] %s5907_s11 }
   0xd   :  { %5968 = sst [smem:[#allocation49_spill]] %s5908_s12 }
   0xe   :  { %5969 = sst [smem:[#allocation50_spill]] %s5909_s13 }
   0xf   :  { %5970 = sst [smem:[#allocation51_spill]] %s5910_s14 }
  0x10   :  { %5971 = sst [smem:[#allocation52_spill]] %s5911_s15 }
  0x11   :  { %5972 = sst [smem:[#allocation53_spill]] %s5912_s16 }
  0x12   :  { %21 = vsyncpa [#allocation4], 0 }
  0x13   :  { %23 = vsyncpa [#allocation4 + $0x1], 0 }
  0x14   :  { %24 = vsyncpa [#allocation7], 0 }
  0x15   :  { %25 = vsyncpa [#allocation10], 0 }
  0x16   :  { %26 = vsyncpa [#allocation5], 0 }
  0x17   :  { %28 = vsyncpa [#allocation5 + $0x1], 0  ;;  %s4865_s21 = smov 0   ;;  %s4867_s22 = smov 0  }
  0x18   :  { %s4869_s23 = smov 0   ;;  %s4871_s24 = smov 0  }
  0x19   :  { %s4873_s25 = smov 0   ;;  %s4875_s26 = smov 0  }
  0x1a   :  { %s4877_s27 = smov 0   ;;  %s4879_s28 = smov 0  }
  0x1b   :  { %s4881_s29 = smov 0   ;;  %s4883_s30 = smov 0  }
  0x1c   :  { %s4885_s0 = smov 0  }
  0x1d LB: > { %5973 = sst [smem:[#allocation21_spill]] %s4721_s23  ;;  %s43_s17 = sadd.s32 1, %s4745_s29  ;;  %s4753_s0 = sphi %s4885_s0, %s34_s0   ;;  %s4749_s30 = sphi %s4883_s30, %s6064_s30   ;;  %s4745_s29 = sphi %s4881_s29, %s6063_s29   ;;  %s4741_s28 = sphi %s4879_s28, %s6062_s28   ;;  %s4737_s27 = sphi %s4877_s27, %s6061_s27   ;;  %s4733_s26 = sphi %s4875_s26, %s6060_s26   ;;  %s4729_s25 = sphi %s4873_s25, %s6059_s25   ;;  %s4725_s24 = sphi %s4871_s24, %s6058_s24   ;;  %s4721_s23 = sphi %s4869_s23, %s6067_s23   ;;  %s4717_s22 = sphi %s4867_s22, %s6066_s22   ;;  %s4713_s21 = sphi %s4865_s21, %s6065_s21  }
  0x1e   : > { %5974 = sst [smem:[#allocation22_spill]] %s4725_s24  ;;  %s46_s18 = sadd.s32 1, %s4749_s30 }
  0x1f   : > { %5975 = sst [smem:[#allocation23_spill]] %s4729_s25  ;;  %p44_p0 = scmp.ge.s32.totalorder %s43_s17, 2 }
  0x20   : > { %5976 = sst [smem:[#allocation24_spill]] %s4733_s26  ;;  %s53_s19 = sadd.s32 1, %s4733_s26 }
  0x21   : > { %5977 = sst [smem:[#allocation25_spill]] %s4737_s27  ;;  %p5919_p1 = scmp.ne.s32.totalorder %s4733_s26, %s4729_s25 }
  0x22   : > { %5978 = sst [smem:[#allocation26_spill]] %s4741_s28  ;;  %p5921_p2 = scmp.eq.s32.totalorder %s4753_s0, 0 }
  0x23   : > { %5979 = sst [smem:[#allocation27_spill]] %s4745_s29  ;;  %s6069_s17 = smov (%p44_p0, %s43_s17), 0 }
  0x24   : > { %5980 = sst [smem:[#allocation28_spill]] %s4749_s30  ;;  %s6071_s18 = smov (!%p44_p0, %s46_s18), %s4749_s30 }
  0x25   : > { %5981 = sst [smem:[#allocation29_spill]] %s4753_s0  ;;  %p4934_p3 = por %p5921_p2, %p5919_p1 }
  0x26   : > { %5982 = sst [smem:[#allocation30_spill]] %s6069_s17  ;;  %s139_s16 = ssub.s32 %s4745_s29, %s6069_s17 }
  0x27   : > { %p48_p4 = scmp.ge.s32.totalorder %s6071_s18, 2  ;;  %p4940_p5 = scmp.eq.s32.totalorder %s139_s16, 0 }
  0x28   : > { %p5920_p6 = scmp.lt.s32.totalorder %s4753_s0, 4  ;;  %s528_s14 = sand.u32 1, %s4753_s0  }
  0x29   : > { %s6073_s18 = smov (%p48_p4, %s6071_s18), 0  ;;  %s530_s13 = sand.u32 1, %s4733_s26  }
  0x2a   : > { %5985 = sst [smem:[#allocation31_spill]] %s6073_s18  ;;  %s50_s15 = ssub.s32 %s4749_s30, %s6073_s18 }
  0x2b   : > { %p51_p7 = scmp.eq.s32.totalorder %s50_s15, 0  ;;  %s3898_s11 = sshll.u32 %s4749_s30, 8 }
  0x2c   : > { %s3769_s9 = sshll.u32 %s530_s13, 4  ;;  %s5987_s17 = sld [smem:[#allocation37_spill]] }
  0x2d   : > { %s4953_s5 = scalar_select %p51_p7, %s4733_s26, %s53_s19  }
  0x2e   : > { %p4964_p8 = pnand %p5920_p6, %p4934_p3  ;;  %s532_s15 = scalar_lea.vmem [#allocation3], %s3769_s9 }
  0x2f   : > { %5986 = sst [smem:[#allocation32_spill]] %s4953_s5  ;;  %s539_s19 = sshll.u32 %s532_s15, 4  ;;  %s4968_s19 = int_to_ptr.vmem [resolvable:$true] %s539_s19 }
  0x30   : > { %s4970_s13 = scalar_lea.sflag [#allocation4], %s528_s14  ;;  %p4387_p10 = pneg %p4964_p8 }
  0x32   : > { %s4958_s27 = scalar_lea.hbm %s5987_s17, %s3898_s11  ;;  %s4390_s20 = scalar_lea.hbm %s5987_s17, 512 }
  0x33   : > { %s4385_s7 = scalar_lea.hbm %s4958_s27, 256  ;;  %p4391_p13 = scmp.lt.u32.totalorder %s4958_s27, %s5987_s17 }
  0x34   : > { %p4386_p9 = scmp.ne.s32.totalorder %s4958_s27, %s4385_s7  ;;  %p4392_p0 = scmp.lt.u32.totalorder %s4390_s20, %s4385_s7 }
  0x35   : > { %p4394_p4 = scmp.lt.u32.totalorder %s4385_s7, %s4958_s27 }
  0x36   : > { %p4388_p11 = pnand %p4387_p10, %p4386_p9  ;;  %p4393_p3 = por %p4392_p0, %p4391_p13 }
  0x38   : > { %p4389_p12 = pneg %p4388_p11  ;;  %p4395_p7 = por %p4394_p4, %p4393_p3 }
  0x3a   : > { %p4396_p1 = pnand %p4395_p7, %p4389_p12 }
  0x3c   : > { %4399 = shalt.err (!%p4396_p1)
}
  0x3d   : > { %s4400_s9 = scalar_lea.vmem %s4968_s19, 256  ;;  %s4755_s14 = smov [#allocation3]  }
  0x3e   : > { %p4401_p9 = scmp.ne.s32.totalorder %s4968_s19, %s4400_s9  ;;  %s4405_s15 = sshll.u32 %s4755_s14, 4  ;;  %s4406_s15 = int_to_ptr.vmem [resolvable:$false] %s4405_s15 }
  0x3f   : > { %s4407_s30 = scalar_lea.vmem %s4406_s15, 512  ;;  %p4408_p2 = scmp.lt.s32.totalorder %s4968_s19, %s4406_s15 }
  0x40   : > { %p4403_p11 = pnand %p4401_p9, %p4387_p10  ;;  %p4409_p13 = scmp.lt.s32.totalorder %s4407_s30, %s4400_s9 }
  0x42   : > { %p4404_p6 = pneg %p4403_p11  ;;  %p4410_p0 = por %p4409_p13, %p4408_p2 }
  0x44   : > { %p4411_p3 = pnand %p4410_p0, %p4404_p6 }
  0x46   : > { %4414 = shalt.err (!%p4411_p3)
}
  0x47   : > { %s5922_s18 = smov 128   ;;  %s5924_s7 = smov 8  }
  0x48   : > { %4104 = dma.hbm_to_vmem [thread:$0]  (!%p4964_p8), %s4958_s27, 256, %s4968_s19, %s4970_s13, %s5922_s18, %s5922_s18, %s5924_s7  }
  0x49   : > { %s4064_s8 = smul.u32 3072, %s4745_s29  ;;  %s142_s11 = sadd.s32 1, %s4721_s23 }
  0x4a   : > { %p149_p1 = scmp.ne.s32.totalorder %s4721_s23, %s4717_s22  ;;  %p5990_p2 = scmp.eq.s32.totalorder %s4753_s0, 0 }
  0x4b   : > { %s5008_s20 = scalar_select %p4940_p5, %s4721_s23, %s142_s11  }
  0x4c   : > { %p151_p6 = por %p149_p1, %p5990_p2  ;;  %s5013_s9 = sand.u32 1, %s4721_s23  }
  0x4d   : > { %5989 = sst [smem:[#allocation33_spill]] %s5008_s20  ;;  %s4063_s14 = smul.u32 192, %s5013_s9 }
  0x4e   : > { %s5991_s4 = sld [smem:[#allocation41_spill]]  ;;  %p5992_p10 = scmp.lt.s32.totalorder %s4753_s0, 4 }
  0x4f   : > { %s553_s28 = scalar_lea.vmem [#allocation11], %s4063_s14 }
  0x50   : > { %p5023_p8 = pnand %p5992_p10, %p151_p6  ;;  %s560_s19 = sshll.u32 %s553_s28, 4  ;;  %s5027_s19 = int_to_ptr.vmem [resolvable:$true] %s560_s19 }
  0x52   : > { %s5993_s27 = scalar_select %p5023_p8, 1, 0 }
  0x53   : > { %p5033_p12 = pneg %p5023_p8 }
  0x54   : > { %s5019_s16 = scalar_lea.hbm %s5991_s4, %s4064_s8  ;;  %s4420_s18 = scalar_lea.hbm %s5991_s4, 6144 }
  0x55   : > { %s4415_s11 = scalar_lea.hbm %s5019_s16, 3072  ;;  %p4421_p9 = scmp.lt.u32.totalorder %s5019_s16, %s5991_s4 }
  0x56   : > { %p4416_p5 = scmp.ne.s32.totalorder %s5019_s16, %s4415_s11  ;;  %p4422_p11 = scmp.lt.u32.totalorder %s4420_s18, %s4415_s11 }
  0x57   : > { %s5994_s8 = scalar_select %p5033_p12, 1, 0 }
  0x58   : > { %p4418_p4 = pnand %p5033_p12, %p4416_p5  ;;  %p4423_p13 = por %p4422_p11, %p4421_p9 }
  0x59   : > { %p4424_p0 = scmp.lt.u32.totalorder %s4415_s11, %s5019_s16 }
  0x5a   : > { %p4419_p7 = pneg %p4418_p4 }
  0x5b   : > { %p4425_p3 = por %p4424_p0, %p4423_p13 }
  0x5d   : > { %p4426_p1 = pnand %p4425_p3, %p4419_p7 }
  0x5f   : > { %4429 = shalt.err (!%p4426_p1)
}
  0x60   : > { %s4430_s28 = scalar_lea.vmem %s5027_s19, 3072  ;;  %s4758_s15 = smov [#allocation11]  }
  0x61   : > { %p4431_p2 = scmp.ne.s32.totalorder %s5027_s19, %s4430_s28  ;;  %s4435_s30 = sshll.u32 %s4758_s15, 4  ;;  %s4436_s30 = int_to_ptr.vmem [resolvable:$false] %s4435_s30 }
  0x62   : > { %s4437_s7 = scalar_lea.vmem %s4436_s30, 6144  ;;  %p4438_p5 = scmp.lt.s32.totalorder %s5027_s19, %s4436_s30 }
  0x63   : > { %p4433_p6 = pnand %p4431_p2, %p5033_p12  ;;  %p4439_p4 = scmp.lt.s32.totalorder %s4437_s7, %s4430_s28 }
  0x65   : > { %p4434_p10 = pneg %p4433_p6  ;;  %p4440_p9 = por %p4439_p4, %p4438_p5 }
  0x67   : > { %p4441_p11 = pnand %p4440_p9, %p4434_p10 }
  0x69   : > { %4444 = shalt.err (!%p4441_p11)
}
  0x6a   : > { %s4759_s18 = smov 192   ;;  %s4760_s11 = smov 12  }
  0x6b   : > { %4107 = dma.hbm_to_vmem [thread:$0]  (!%p5023_p8), %s5019_s16, 3072, %s5027_s19, %s4970_s13, %s4759_s18, %s4759_s18, %s4760_s11  }
  0x6c   : > { %s3773_s14 = sshll.u32 %s5013_s9, 6  ;;  %s3899_s15 = sshll.u32 %s4745_s29, 10 }
  0x6d   : > { %s5995_s6 = sld [smem:[#allocation43_spill]]  ;;  %s581_s30 = scalar_lea.vmem [#allocation12], %s3773_s14 }
  0x6e   : > { %s588_s7 = sshll.u32 %s581_s30, 4  ;;  %s5064_s7 = int_to_ptr.vmem [resolvable:$true] %s588_s7 }
  0x73   : > { %s5062_s28 = scalar_lea.hbm %s5995_s6, %s3899_s15  ;;  %s4450_s18 = scalar_lea.hbm %s5995_s6, 2048 }
  0x74   : > { %s4445_s5 = scalar_lea.hbm %s5062_s28, 1024  ;;  %p4451_p3 = scmp.lt.u32.totalorder %s5062_s28, %s5995_s6 }
  0x75   : > { %p4446_p7 = scmp.ne.s32.totalorder %s5062_s28, %s4445_s5  ;;  %p4452_p1 = scmp.lt.u32.totalorder %s4450_s18, %s4445_s5 }
  0x76   : > { %p4454_p6 = scmp.lt.u32.totalorder %s4445_s5, %s5062_s28 }
  0x77   : > { %p4448_p13 = pnand %p4446_p7, %p5033_p12  ;;  %p4453_p2 = por %p4452_p1, %p4451_p3 }
  0x79   : > { %p4449_p0 = pneg %p4448_p13  ;;  %p4455_p10 = por %p4454_p6, %p4453_p2 }
  0x7b   : > { %p4456_p5 = pnand %p4455_p10, %p4449_p0 }
  0x7d   : > { %4459 = shalt.err (!%p4456_p5)
}
  0x7e   : > { %s4460_s11 = scalar_lea.vmem %s5064_s7, 1024  ;;  %s4761_s14 = smov [#allocation12]  }
  0x7f   : > { %p4461_p4 = scmp.ne.s32.totalorder %s5064_s7, %s4460_s11  ;;  %s4465_s15 = sshll.u32 %s4761_s14, 4  ;;  %s4466_s15 = int_to_ptr.vmem [resolvable:$false] %s4465_s15 }
  0x80   : > { %s4467_s30 = scalar_lea.vmem %s4466_s15, 2048  ;;  %p4468_p7 = scmp.lt.s32.totalorder %s5064_s7, %s4466_s15 }
  0x81   : > { %p4463_p9 = pnand %p4461_p4, %p5033_p12  ;;  %p4469_p13 = scmp.lt.s32.totalorder %s4467_s30, %s4460_s11 }
  0x83   : > { %p4464_p11 = pneg %p4463_p9  ;;  %p4470_p3 = por %p4469_p13, %p4468_p7 }
  0x85   : > { %p4471_p1 = pnand %p4470_p3, %p4464_p11 }
  0x87   : > { %4474 = shalt.err (!%p4471_p1)
}
  0x88   : > { %s5929_s5 = smov 64   ;;  %s5931_s16 = smov 4  }
  0x89   : > { %4110 = dma.hbm_to_vmem [thread:$0]  (!%p5023_p8), %s5062_s28, 1024, %s5064_s7, %s4970_s13, %s5929_s5, %s5929_s5, %s5931_s16  }
  0x8a   : > { %s5092_s19 = sadd.s32 4294967295, %s4753_s0   ;;  %s3763_s18 = sadd.s32 4294967294, %s4753_s0  }
  0x8b   : > { %p66_p0 = scmp.ne.s32.totalorder %s4729_s25, %s4725_s24  ;;  %p5942_p2 = scmp.eq.s32.totalorder %s5092_s19, 0 }
  0x8c   : > { %p155_p6 = scmp.ne.s32.totalorder %s4717_s22, %s4713_s21  ;;  %p465_p10 = scmp.eq.s32.totalorder %s5092_s19, 3 }
  0x8d   : > { %p471_p5 = scmp.eq.s32.totalorder %s3763_s18, 3  ;;  %p5103_p4 = por %p5942_p2, %p66_p0 }
  0x8e   : > { %p5109_p9 = por %p155_p6, %p5942_p2  ;;  %p5999_p11 = scmp.ne.s32.totalorder %s4733_s26, %s4729_s25 }
  0x8f   : > { %s5996_s4 = scalar_select %p5103_p4, 1, 0 }
  0x90   : > { %s5997_s28 = scalar_select %p5109_p9, 1, 0 }
  0x91   : > { %p5116_p7 = por %p465_p10, %p5999_p11  ;;  %p5120_p13 = por %p471_p5, %p66_p0 }
  0x92   : > { %5998 = sst [smem:[#allocation34_spill]] %s5997_s28  ;;  %p3764_p3 = scmp.ge.s32.totalorder %s4753_s0, 1 }
  0x93   : > { %s6000_s7 = scalar_select %p5116_p7, 1, 0 }
  0x94   : > { %s6002_s21 = scalar_select %p5120_p13, 1, 0 }
  0x95   : > { %6001 = sst [smem:[#allocation35_spill]] %s6000_s7  ;;  %p478_p1 = scmp.lt.s32.totalorder %s4753_s0, 5 }
  0x96   : > { %6003 = sst [smem:[#allocation36_spill]] %s6002_s21  ;;  %s4764_s11 = smov [#allocation6]  }
  0x97   : > { %p5126_p8 = pnand %p3764_p3, %p478_p1  ;;  %s490_s14 = sshll.u32 %s4764_s11, 4  ;;  %s5130_s14 = int_to_ptr.vmem [resolvable:$true] %s490_s14 }
  0x98   : > { %s5936_s15 = sshll.u32 %s5013_s9, 7  ;;  %s5946_s30 = sshll.u32 %s4745_s29, 11 }
  0x99   : > { %s6004_s17 = scalar_select %p5126_p8, 1, 0 }
  0x9a   : > { %p4091_p6 = pneg %p5126_p8  ;;  %s620_s18 = scalar_lea.vmem [#allocation13], %s5936_s15 }
  0x9b   : > { %s627_s5 = sshll.u32 %s620_s18, 4  ;;  %s6006_s10 = sld [smem:[#allocation47_spill]]  ;;  %s5151_s5 = int_to_ptr.vmem [resolvable:$true] %s627_s5 }
  0x9c   : > { %p5140_p0 = pnand %p4091_p6, %p5942_p2  ;;  %s4765_s20 = smov [#allocation8]  }
  0x9d   : > { %s5153_s23 = sshll.u32 %s4765_s20, 4  ;;  %s6007_s1 = sld [smem:[#allocation38_spill]]  ;;  %s504_s23 = int_to_ptr.vmem [resolvable:$true] %s5153_s23 }
  0x9e   : > { %s6005_s16 = scalar_select %p5140_p0, 1, 0 }
  0x9f   : > { %p5163_p5 = pneg %p5140_p0 }
  0xa1   : > { %s5149_s11 = scalar_lea.hbm %s6006_s10, %s5946_s30 }
  0xa3   : > { %s4475_s18 = scalar_lea.hbm %s6007_s1, 256 }
  0xa4   : > { %p4476_p10 = scmp.ne.s32.totalorder %s6007_s1, %s4475_s18  ;;  %p4482_p1 = scmp.lt.u32.totalorder %s4475_s18, %s6007_s1 }
  0xa6   : > { %p4478_p11 = pnand %p5163_p5, %p4476_p10 }
  0xa8   : > { %p4479_p3 = pneg %p4478_p11 }
  0xaa   : > { %p4484_p6 = pnand %p4482_p1, %p4479_p3 }
  0xac   : > { %4487 = shalt.err (!%p4484_p6)
}
  0xad   : > { %s4488_s24 = scalar_lea.vmem %s5130_s14, 256  ;;  %p4496_p9 = scmp.lt.s32.totalorder %s5130_s14, %s5130_s14 }
  0xae   : > { %p4489_p2 = scmp.ne.s32.totalorder %s5130_s14, %s4488_s24  ;;  %p4497_p4 = scmp.lt.s32.totalorder %s4488_s24, %s4488_s24 }
  0xb0   : > { %p4491_p13 = pnand %p4489_p2, %p5163_p5  ;;  %p4498_p10 = por %p4497_p4, %p4496_p9 }
  0xb2   : > { %p4492_p7 = pneg %p4491_p13 }
  0xb4   : > { %p4499_p11 = pnand %p4498_p10, %p4492_p7 }
  0xb6   : > { %4502 = shalt.err (!%p4499_p11)
}
  0xb7   : > { %s6009_s0 = smov 8   ;;  %s6010_s20 = smov 128  }
  0xb8   : > { %4094 = dma.hbm_to_vmem [thread:$0]  (!%p5140_p0), %s6007_s1, 256, %s5130_s14, [#allocation7], %s6010_s20, %s6010_s20, %s6009_s0  }
  0xb9   : > { %s4503_s18 = scalar_lea.hbm %s5149_s11, 2048  ;;  %s4508_s24 = scalar_lea.hbm %s6006_s10, 4096 }
  0xba   : > { %p4504_p2 = scmp.ne.s32.totalorder %s5149_s11, %s4503_s18  ;;  %p4509_p7 = scmp.lt.u32.totalorder %s5149_s11, %s6006_s10 }
  0xbb   : > { %p4510_p13 = scmp.lt.u32.totalorder %s4508_s24, %s4503_s18  ;;  %p4512_p1 = scmp.lt.u32.totalorder %s4503_s18, %s5149_s11 }
  0xbc   : > { %p4506_p4 = pnand %p4504_p2, %p5033_p12 }
  0xbd   : > { %p4511_p3 = por %p4510_p13, %p4509_p7 }
  0xbe   : > { %p4507_p9 = pneg %p4506_p4 }
  0xbf   : > { %p4513_p6 = por %p4512_p1, %p4511_p3 }
  0xc1   : > { %p4514_p10 = pnand %p4513_p6, %p4507_p9 }
  0xc3   : > { %4517 = shalt.err (!%p4514_p10)
}
  0xc4   : > { %s4518_s14 = scalar_lea.vmem %s5151_s5, 2048  ;;  %s4766_s21 = smov [#allocation13]  }
  0xc5   : > { %p4519_p11 = scmp.ne.s32.totalorder %s5151_s5, %s4518_s14  ;;  %s4523_s15 = sshll.u32 %s4766_s21, 4  ;;  %s4524_s15 = int_to_ptr.vmem [resolvable:$false] %s4523_s15 }
  0xc6   : > { %s4525_s28 = scalar_lea.vmem %s4524_s15, 4096  ;;  %p4526_p8 = scmp.lt.s32.totalorder %s5151_s5, %s4524_s15 }
  0xc7   : > { %p4521_p2 = pnand %p4519_p11, %p5033_p12  ;;  %p4527_p0 = scmp.lt.s32.totalorder %s4525_s28, %s4518_s14 }
  0xc9   : > { %p4522_p4 = pneg %p4521_p2  ;;  %p4528_p7 = por %p4527_p0, %p4526_p8 }
  0xcb   : > { %p4529_p13 = pnand %p4528_p7, %p4522_p4 }
  0xcd   : > { %4532 = shalt.err (!%p4529_p13)
}
  0xce   : > { %p6011_p9 = scmp.ne.s32.totalorder %s5993_s27, 0  ;;  %s6012_s2 = sld [smem:[#allocation39_spill]] }
  0xd0   : > { %4113 = dma.hbm_to_vmem [thread:$0]  (!%p6011_p9), %s5149_s11, 2048, %s5151_s5, %s4970_s13, %s6010_s20, %s6010_s20, %s6009_s0  }
  0xd4   : > { %s4533_s6 = scalar_lea.hbm %s6012_s2, 512 }
  0xd5   : > { %p4534_p8 = scmp.ne.s32.totalorder %s6012_s2, %s4533_s6  ;;  %p4540_p1 = scmp.lt.u32.totalorder %s4533_s6, %s6012_s2 }
  0xd7   : > { %p4536_p0 = pnand %p4534_p8, %p5163_p5 }
  0xd9   : > { %p4537_p3 = pneg %p4536_p0 }
  0xdb   : > { %p4542_p6 = pnand %p4540_p1, %p4537_p3 }
  0xdd   : > { %4545 = shalt.err (!%p4542_p6)
}
  0xde   : > { %s4546_s15 = scalar_lea.vmem %s504_s23, 512  ;;  %p4554_p4 = scmp.lt.s32.totalorder %s504_s23, %s504_s23 }
  0xdf   : > { %p4547_p10 = scmp.ne.s32.totalorder %s504_s23, %s4546_s15  ;;  %p4555_p7 = scmp.lt.s32.totalorder %s4546_s15, %s4546_s15 }
  0xe1   : > { %p4549_p11 = pnand %p4547_p10, %p5163_p5  ;;  %p4556_p13 = por %p4555_p7, %p4554_p4 }
  0xe3   : > { %p4550_p2 = pneg %p4549_p11 }
  0xe5   : > { %p4557_p9 = pnand %p4556_p13, %p4550_p2 }
  0xe7   : > { %4560 = shalt.err (!%p4557_p9)
}
  0xe8   : > { %p6013_p8 = scmp.ne.s32.totalorder %s6005_s16, 0  ;;  %s6014_s5 = smov 4  }
  0xe9   : > { %s6015_s11 = smov 64   ;;  %s4767_s28 = smov [#allocation9]  }
  0xea   : > { %4097 = dma.hbm_to_vmem [thread:$0]  (!%p6013_p8), %s6012_s2, 512, %s504_s23, [#allocation7], %s6015_s11, %s6015_s11, %s6014_s5  }
  0xeb   : > { %s517_s30 = sshll.u32 %s4767_s28, 4  ;;  %s6016_s18 = sshll.u32 %s4745_s29, 11  ;;  %s518_s30 = int_to_ptr.vmem [resolvable:$true] %s517_s30 }
  0xec   : > { %s6017_s12 = sld [smem:[#allocation49_spill]]  ;;  %s6018_s3 = sld [smem:[#allocation40_spill]] }
  0xf2   : > { %s5239_s24 = scalar_lea.hbm %s6017_s12, %s6016_s18  ;;  %s4561_s15 = scalar_lea.hbm %s6018_s3, 16 }
  0xf3   : > { %p4562_p9 = scmp.ne.s32.totalorder %s6018_s3, %s4561_s15  ;;  %p4568_p1 = scmp.lt.u32.totalorder %s4561_s15, %s6018_s3 }
  0xf5   : > { %p4564_p0 = pnand %p4562_p9, %p5163_p5 }
  0xf7   : > { %p4565_p3 = pneg %p4564_p0 }
  0xf9   : > { %p4570_p6 = pnand %p4568_p1, %p4565_p3 }
  0xfb   : > { %4573 = shalt.err (!%p4570_p6)
}
  0xfc   : > { %s4574_s20 = scalar_lea.vmem %s518_s30, 16  ;;  %s4581_s28 = scalar_lea.vmem %s518_s30, 32 }
  0xfd   : > { %p4575_p10 = scmp.ne.s32.totalorder %s518_s30, %s4574_s20  ;;  %p4582_p4 = scmp.lt.s32.totalorder %s518_s30, %s518_s30 }
  0xfe   : > { %p4583_p7 = scmp.lt.s32.totalorder %s4581_s28, %s4574_s20 }
  0xff   : > { %p4577_p11 = pnand %p4575_p10, %p5163_p5 }
 0x100   : > { %p4584_p13 = por %p4583_p7, %p4582_p4 }
 0x101   : > { %p4578_p2 = pneg %p4577_p11 }
 0x103   : > { %p4585_p12 = pnand %p4584_p13, %p4578_p2 }
 0x105   : > { %4588 = shalt.err (!%p4585_p12)
}
 0x106   : > { %4100 = dma.hbm_to_vmem [thread:$0]  (!%p6013_p8), %s6018_s3, 16, %s518_s30, [#allocation10]  }
 0x107   : > { %s6019_s7 = sshll.u32 %s5013_s9, 7  ;;  %s4589_s26 = scalar_lea.hbm %s5239_s24, 2048 }
 0x108   : > { %s648_s18 = scalar_lea.vmem [#allocation14], %s6019_s7  ;;  %p4590_p5 = scmp.ne.s32.totalorder %s5239_s24, %s4589_s26 }
 0x109   : > { %s655_s6 = sshll.u32 %s648_s18, 4  ;;  %p6020_p12 = scmp.ne.s32.totalorder %s5994_s8, 0  ;;  %s5261_s6 = int_to_ptr.vmem [resolvable:$true] %s655_s6 }
 0x10a   : > { %s4594_s21 = scalar_lea.hbm %s6017_s12, 4096  ;;  %p4595_p3 = scmp.lt.u32.totalorder %s5239_s24, %s6017_s12 }
 0x10b   : > { %p4592_p9 = pnand %p4590_p5, %p6020_p12  ;;  %p4596_p1 = scmp.lt.u32.totalorder %s4594_s21, %s4589_s26 }
 0x10c   : > { %p4598_p6 = scmp.lt.u32.totalorder %s4589_s26, %s5239_s24 }
 0x10d   : > { %p4593_p0 = pneg %p4592_p9  ;;  %p4597_p8 = por %p4596_p1, %p4595_p3 }
 0x10f   : > { %p4599_p10 = por %p4598_p6, %p4597_p8 }
 0x111   : > { %p4600_p11 = pnand %p4599_p10, %p4593_p0 }
 0x113   : > { %4603 = shalt.err (!%p4600_p11)
}
 0x114   : > { %s4604_s9 = scalar_lea.vmem %s5261_s6, 2048  ;;  %s4768_s30 = smov [#allocation14]  }
 0x115   : > { %p4605_p2 = scmp.ne.s32.totalorder %s5261_s6, %s4604_s9  ;;  %s4609_s0 = sshll.u32 %s4768_s30, 4  ;;  %s4610_s0 = int_to_ptr.vmem [resolvable:$false] %s4609_s0 }
 0x116   : > { %s4611_s20 = scalar_lea.vmem %s4610_s0, 4096  ;;  %p4612_p13 = scmp.lt.s32.totalorder %s5261_s6, %s4610_s0 }
 0x117   : > { %p4607_p4 = pnand %p4605_p2, %p6020_p12  ;;  %p4613_p5 = scmp.lt.s32.totalorder %s4611_s20, %s4604_s9 }
 0x119   : > { %p4608_p7 = pneg %p4607_p4  ;;  %p4614_p9 = por %p4613_p5, %p4612_p13 }
 0x11b   : > { %p4615_p3 = pnand %p4614_p9, %p4608_p7 }
 0x11d   : > { %4618 = shalt.err (!%p4615_p3)
}
 0x11e   : > { %p6021_p0 = scmp.ne.s32.totalorder %s5993_s27, 0  ;;  %p6022_p12 = scmp.ne.s32.totalorder %s6004_s17, 0 }
 0x11f   : > { %s687_s8 = sand.u32 (!%p6022_p12), 1, %s5092_s19   ;;  %s5292_s28 = sand.u32 (!%p6022_p12), 1, %s4729_s25  }
 0x120   : > { %4116 = dma.hbm_to_vmem [thread:$0]  (!%p6021_p0), %s5239_s24, 2048, %s5261_s6, %s4970_s13, %s6015_s11, %s6015_s11, %s6014_s5  }
 0x121   : > { %685 = sbr.rel (%p6022_p12) target bundleno = 2986 (0xbaa), region = 84  ;;  %s3783_s1 = sshll.u32 (!%p6022_p12), %s5292_s28, 4 }
 0x122   : > { %s688_s10 = scalar_lea.sflag (!%p6022_p12), [#allocation4], %s687_s8  ;;  %s5295_s27 = scalar_lea.vmem (!%p6022_p12), [#allocation3], %s3783_s1 }
 0x123   : > { %p6023_p1 = scmp.ne.s32.totalorder (!%p6022_p12), %s5996_s4, 0 }
 0x128   : > { %4692 = dma.done.wait (%p6023_p1), %s688_s10, 256  }
 0x129   : > { %4694 = vsyncadd (%p6023_p1), %s688_s10, 4294967040  ;;  %p6024_p8 = scmp.eq.s32.totalorder %s5092_s19, 0 }
 0x12b   : > { %4696 = dma.done.wait (%p6024_p8), [#allocation7], 768   ;;  %p6025_p6 = pmov %p6024_p8 }
 0x12d   : > { %4698 = vsyncadd (%p6025_p6), [#allocation7], 4294966528  ;;  %p6026_p10 = pmov %p6025_p6 }
 0x12e   : > { %p6027_p11 = pmov %p6025_p6 }
 0x12f   : > { %4700 = dma.done.wait (%p6026_p10), [#allocation10], 16  }
 0x130   : > { %4702 = vsyncadd (%p6027_p11), [#allocation10], 4294967280  ;;  %s6028_s13 = sld [smem:[#allocation34_spill]]  ;;  %s710_s17 = sand.u32 1, %s4717_s22  }
 0x131   : > { %s4065_s5 = smul.u32 192, %s710_s17 }
 0x133   : > { %s5310_s11 = scalar_lea.vmem [#allocation11], %s4065_s5 }
 0x136   : > { %p6029_p2 = scmp.ne.s32.totalorder %s6028_s13, 0 }
 0x138   : > { %4704 = dma.done.wait (%p6029_p2), %s688_s10, 8192  }
 0x139   : > { %4706 = vsyncadd (%p6029_p2), %s688_s10, 4294959104  ;;  %s6030_s4 = sld [smem:[#allocation25_spill]]  ;;  %s3787_s24 = sshll.u32 %s710_s17, 6 }
 0x13a   : > { %s3788_s7 = sshll.u32 %s710_s17, 7  ;;  %s3790_s18 = sshll.u32 %s5292_s28, 1 }
 0x13b   : > { %s6031_s14 = sld [smem:[#allocation44_spill]]  ;;  %s6034_s17 = sld [smem:[#allocation42_spill]] }
 0x13c   : > { %s6035_s29 = sld [smem:[#allocation48_spill]]  ;;  %s6037_s30 = sld [smem:[#allocation51_spill]] }
 0x13d   : > { %s6038_s1 = sld [smem:[#allocation52_spill]]  ;;  %s5359_s13 = scalar_lea.vmem [#allocation13], %s3788_s7 }
 0x13f   : > { %p835_p4 = scmp.lt.s32.totalorder %s6030_s4, 1  ;;  %p3792_p7 = scmp.ne.s32.totalorder %s6030_s4, 0 }
 0x140   : > { %v4236_v0 = vld [vmem:[#allocation8] sm:$0xff] (!%p3792_p7)   ;;  %v4769_v1 = vmov (!%p3792_p7), 0.0   ;;  %v4237_v2 = vld [vmem:[#allocation8 + $0x8] sm:$0xff] (!%p3792_p7)   ;;  %vm4770_vm0 = vmmov (!%p3792_p7), 0   ;;  %v4238_v3 = vld [vmem:[#allocation8 + $0x10] sm:$0xff] (!%p3792_p7)   ;;  %vm908_vm1 = vcmask (!%p3792_p7), 523264  }
 0x141   : > { %s5319_s19 = scalar_select %p835_p4, %s6030_s4, 1 }
 0x142   : > { %3963 = vmatprep.subr.bf16.mxu0 (!%p3792_p7), %v4769_v1  ;;  %3971 = vmatprep.mubr.msk.bf16.mxu0 (!%p3792_p7), %vm4770_vm0, %v4769_v1  ;;  %v4239_v4 = vld [vmem:[#allocation8 + $0x18] sm:$0xff] (!%p3792_p7)   ;;  %v866_v5 = vld [vmem:[%s5295_s27] sm:$0xff] (!%p3792_p7) }
 0x143   : > { %s4066_s6 = smul.u32 3, %s5319_s19  ;;  %s841_s21 = scalar_lea.vmem %s6031_s14, %s5319_s19  ;;  %3964 = vmatpush3.bf16.msra.mxu0 (!%p3792_p7), %v4236_v0  ;;  %v867_v6 = vld [vmem:[%s5295_s27 + $0x8] sm:$0xff] (!%p3792_p7)  ;;  %v3793_v8 = vld [vmem:[#allocation9] ss:$0 sm:$0xff] (!%p3792_p7)  ;;  %v953_v10 = vld [vmem:[#allocation6] sm:$0xff] (!%p3792_p7) }
 0x144   : > { %s3791_s2 = sshll.u32 %s5319_s19, 1  ;;  %s6036_s14 = sld [smem:[#allocation50_spill]]  ;;  %3965 = vmatprep.subr.bf16.mxu0 (!%p3792_p7), %v4769_v1  ;;  %v868_v7 = vpack.c.bf16 (!%p3792_p7), %v867_v6, %v866_v5  ;;  %v954_v14 = vld [vmem:[#allocation6 + $0x8] sm:$0xff] (!%p3792_p7) }
 0x145   : > { %s5337_s5 = scalar_lea.vmem %s6034_s17, %s4066_s6  ;;  %s5343_s25 = scalar_lea.vmem %s6035_s29, %s3791_s2 }
 0x146   : > { %s857_s0 = scalar_lea.vmem %s6037_s30, %s5319_s19  ;;  %s860_s10 = scalar_lea.vmem %s6038_s1, %s5319_s19 }
 0x147   : > { %s5357_s6 = scalar_lea.vmem [#allocation12], %s3787_s24  ;;  %s5361_s17 = scalar_lea.vmem [#allocation14], %s3788_s7  ;;  %3966 = vmatpush3.bf16.msra.mxu0 (!%p3792_p7), %v4237_v2 }
 0x148   : > { %s5363_s2 = scalar_lea.vmem [#allocation15], %s3790_s18  ;;  %865 = sbr.rel (%p3792_p7) target bundleno = 557 (0x22d), region = 120  ;;  %3967 = vmatprep.subr.bf16.mxu0 (!%p3792_p7), %v4769_v1 }
 0x14a   : > { %s854_s15 = scalar_lea.vmem %s6036_s14, %s5319_s19 }
 0x14b   : > { %3968 = vmatpush3.bf16.msra.mxu0 (!%p3792_p7), %v4238_v3 }
 0x14c   : > { %3969 = vmatprep.subr.bf16.mxu0 (!%p3792_p7), %v4769_v1 }
 0x14f   : > { %3970 = vmatpush3.bf16.msra.mxu0 %v4239_v4 }
 0x152   : > { %3972 = vmatmul.mubr.msk.bf16.vlgmr.msra.gmra.mrb[0].mxu0 %vm908_vm1, %v868_v7 }
 0x225   : > { %v946_v9 = vpop.f32.mrb[0].mxu0 }
 0x226   : > { %v947_v11 = vadd.f32 %v3793_v8, %v946_v9  ;;  %v3973_v12 = vpop.f32.mrb[1].mxu0 }
 0x227   : > { %v949_v13 = vpop.f32.mrb[2].mxu0 }
 0x228   : > { %v955_v15 = vadd.f32 %v953_v10, %v947_v11  ;;  %v950_v16 = vadd.f32 %v3793_v8, %v949_v13  ;;  %v3974_v17 = vpop.f32.mrb[3].mxu0 }
 0x22a   : > { %957 = vst [vmem:[#allocation2] sm:$0xff] %v955_v15  ;;  %v956_v18 = vadd.f32 %v954_v14, %v950_v16 }
 0x22c   : > { %958 = vst [vmem:[#allocation2 + $0x8] sm:$0xff] %v956_v18 }
 0x22d PF: > { %v4255_v19 = vld [vmem:[%s5310_s11 + $0x4] ss:$12 sps:$4 sm:$0xff]   ;;  %v4257_v20 = vld [vmem:[%s5310_s11] ss:$12 sps:$4 sm:$0xff]   ;;  %v4771_v21 = vmov 0   ;;  %v4772_v40 = vmov 0.0   ;;  %v996_v41 = vlaneseq }
 0x22e   : > { %1171 = vmatprep.mubr.bf16.mxu0 %v4771_v21  ;;  %1139 = vmatprep.subr.bf16.mxu0 %v4255_v19  ;;  %v4258_v22 = vld [vmem:[%s5310_s11 + $0x1c] ss:$12 sps:$4 sm:$0xff]   ;;  %v4260_v23 = vld [vmem:[%s5310_s11 + $0x18] ss:$12 sps:$4 sm:$0xff]   ;;  %v4261_v24 = vld [vmem:[%s5310_s11 + $0x34] ss:$12 sps:$4 sm:$0xff]  }
 0x22f   : > { %1140 = vmatpush1.bf16.msra.mxu0 %v4257_v20  ;;  %v4263_v25 = vld [vmem:[%s5310_s11 + $0x30] ss:$12 sps:$4 sm:$0xff]   ;;  %v4264_v26 = vld [vmem:[%s5310_s11 + $0x4c] ss:$12 sps:$4 sm:$0xff]   ;;  %v4266_v27 = vld [vmem:[%s5310_s11 + $0x48] ss:$12 sps:$4 sm:$0xff]   ;;  %3975 = vmatprep.subr.bf16.mxu1 %v4772_v40 }
 0x230   : > { %1141 = vmatprep.subr.bf16.mxu0 %v4258_v22  ;;  %v4267_v28 = vld [vmem:[%s5310_s11 + $0x64] ss:$12 sps:$4 sm:$0xff]   ;;  %v4269_v29 = vld [vmem:[%s5310_s11 + $0x60] ss:$12 sps:$4 sm:$0xff]   ;;  %v4270_v30 = vld [vmem:[%s5310_s11 + $0x7c] ss:$12 sps:$4 sm:$0xff]  }
 0x231   : > { %v4272_v31 = vld [vmem:[%s5310_s11 + $0x78] ss:$12 sps:$4 sm:$0xff]   ;;  %v4273_v32 = vld [vmem:[%s5310_s11 + $0x94] ss:$12 sps:$4 sm:$0xff]   ;;  %v4275_v33 = vld [vmem:[%s5310_s11 + $0x90] ss:$12 sps:$4 sm:$0xff]  }
 0x232   : > { %v4276_v34 = vld [vmem:[%s5310_s11 + $0xac] ss:$12 sps:$4 sm:$0xff]   ;;  %v4278_v35 = vld [vmem:[%s5310_s11 + $0xa8] ss:$12 sps:$4 sm:$0xff]   ;;  %v959_v36 = vld [vmem:[#allocation2] sm:$0xff]  ;;  %v5389_v42 = vshrl.u32 %v996_v41, 7 }
 0x233   : > { %1142 = vmatpush1.bf16.msra.mxu0 %v4260_v23  ;;  %v960_v37 = vld [vmem:[#allocation2 + $0x8] sm:$0xff]  ;;  %v5396_v46 = vld [vmem:[%s5337_s5] sm:$0x7]  ;;  %s4773_s3 = smov 96   ;;  %s4774_s12 = smov 64   ;;  %vm4776_vm2 = vmmov 0  }
 0x234   : > { %1143 = vmatprep.subr.bf16.mxu0 %v4261_v24  ;;  %v961_v38 = vpack.c.bf16 %v960_v37, %v959_v36  ;;  %v4279_v39 = vld [vmem:[%s5310_s11 + $0x8] ss:$12 sps:$4 sm:$0xff]   ;;  %v4280_v43 = vld [vmem:[%s5310_s11 + $0x20] ss:$12 sps:$4 sm:$0xff]   ;;  %v998_v44 = vsub.s32 0, %v5389_v42  ;;  %v1002_v47 = vsub.s32 1, %v5389_v42  ;;  %3991 = vmatprep.mubr.msk.bf16.mxu1 %vm4776_vm2, %v4772_v40 }
 0x235   : > { %3976 = vmatpush3.bf16.msra.mxu1 %v4279_v39  ;;  %v4281_v45 = vld [vmem:[%s5310_s11 + $0x38] ss:$12 sps:$4 sm:$0xff]   ;;  %v4282_v49 = vld [vmem:[%s5310_s11 + $0x50] ss:$12 sps:$4 sm:$0xff]   ;;  %v4283_v54 = vld [vmem:[%s5310_s11 + $0x68] ss:$12 sps:$4 sm:$0xff]  }
 0x236   : > { %3977 = vmatprep.subr.bf16.mxu1 %v4772_v40  ;;  %v999_v48 = vrot.slane %v5396_v46, %v998_v44  ;;  %v1003_v50 = vrot.slane %v5396_v46, %v1002_v47  ;;  %v4284_v59 = vld [vmem:[%s5310_s11 + $0x80] ss:$12 sps:$4 sm:$0xff]   ;;  %s4775_s29 = smov 32   ;;  %v4285_v61 = vld [vmem:[%s5310_s11 + $0x98] ss:$12 sps:$4 sm:$0xff]   ;;  %vm2107_vm3 = vcmask 261120  }
 0x237   : > { %1144 = vmatpush1.bf16.msra.mxu0 %v4263_v25  ;;  %v4286_v62 = vld [vmem:[%s5310_s11 + $0xb0] ss:$12 sps:$4 sm:$0xff]   ;;  %v4777_v63 = vmov 1983009808   ;;  %v4778_v3 = vmov 1934713408  }
 0x238   : > { %1145 = vmatprep.subr.bf16.mxu0 %v4264_v26  ;;  %v1246_v0 = vunpack.c.l.s4 %v4777_v63  ;;  %v1278_v4 = vunpack.c.l.s4 %v4778_v3  ;;  %vm2304_vm4 = vcmask 130048   ;;  %vm2875_vm5 = vcmask 523264   ;;  %s6040_s18 = sld [smem:[#allocation45_spill]]  ;;  %s6042_s5 = sld [smem:[#allocation46_spill]] }
 0x239   : > { %3978 = vmatpush3.bf16.msra.mxu1 %v4280_v43  ;;  %vm2878_vm6 = vcmask 785408  }
 0x23a   : > { %3979 = vmatprep.subr.bf16.mxu1 %v4772_v40  ;;  %v1247_v5 = vunpack.c.0.s8 %v1246_v0  ;;  %v1279_v8 = vunpack.c.0.s8 %v1278_v4 }
 0x23b   : > { %1146 = vmatpush1.bf16.msra.mxu0 %v4266_v27 }
 0x23c   : > { %1147 = vmatprep.subr.bf16.mxu0 %v4267_v28  ;;  %v5449_v9 = vsub.s32 %v1247_v5, %v5389_v42  ;;  %v5452_v16 = vsub.s32 %v1279_v8, %v5389_v42 }
 0x23d   : > { %3980 = vmatpush3.bf16.msra.mxu1 %v4281_v45 }
 0x23e   : > { %3981 = vmatprep.subr.bf16.mxu1 %v4772_v40  ;;  %s6043_s26 = scalar_lea.vmem %s6042_s5, %s5319_s19 }
 0x23f   : > { %1148 = vmatpush1.bf16.msra.mxu0 %v4269_v29 }
 0x240   : > { %1149 = vmatprep.subr.bf16.mxu0 %v4270_v30 }
 0x241   : > { %3982 = vmatpush3.bf16.msra.mxu1 %v4282_v49 }
 0x242   : > { %3983 = vmatprep.subr.bf16.mxu1 %v4772_v40 }
 0x243   : > { %1150 = vmatpush1.bf16.msra.mxu0 %v4272_v31 }
 0x244   : > { %1151 = vmatprep.subr.bf16.mxu0 %v4273_v32 }
 0x245   : > { %3984 = vmatpush3.bf16.msra.mxu1 %v4283_v54 }
 0x246   : > { %3985 = vmatprep.subr.bf16.mxu1 %v4772_v40 }
 0x247   : > { %1152 = vmatpush1.bf16.msra.mxu0 %v4275_v33 }
 0x248   : > { %1153 = vmatprep.subr.bf16.mxu0 %v4276_v34 }
 0x249   : > { %3986 = vmatpush3.bf16.msra.mxu1 %v4284_v59 }
 0x24a   : > { %3987 = vmatprep.subr.bf16.mxu1 %v4772_v40 }
 0x24b   : > { %1154 = vmatpush1.bf16.msra.mxu0 %v4278_v35 }
 0x24c   : > { %4019 = vmatprep.subr.bf16.mxu0 %v4772_v40 }
 0x24d   : > { %3988 = vmatpush3.bf16.msra.mxu1 %v4285_v61 }
 0x24e   : > { %1172 = vmatmul.mubr.bf16.vlgmr.msra.gmra.mrb[0].mxu0 %v961_v38  ;;  %3989 = vmatprep.subr.bf16.mxu1 %v4772_v40 }
 0x24f   : > { %4021 = vmatprep.mubr.msk.bf16.mxu0 %vm4776_vm2, %v4772_v40 }
 0x251   : > { %3990 = vmatpush3.bf16.msra.mxu1 %v4286_v62 }
 0x252   : > { %3995 = vmatprep.subr.bf16.mxu1 %v4772_v40 }
 0x254   : > { %3992 = vmatmul.mubr.bf16.vlgmr.msra.gmra.mrb[0].mxu1 %v961_v38 }
 0x255   : > { %3997 = vmatprep.mubr.msk.bf16.mxu1 %vm4776_vm2, %v4772_v40 }
 0x321   : > { %v1173_v51 = vpop.f32.mrb[0].mxu0 }
 0x322   : > { %v5408_v52 = vadd.f32 %v1173_v51, %v999_v48  ;;  %v1175_v53 = vpop.f32.mrb[1].mxu0 }
 0x323   : > { %v1176_v55 = vadd.f32 %v1175_v53, %v1003_v50  ;;  %v1177_v56 = vpop.f32.mrb[2].mxu0 }
 0x324   : > { %v1179_v57 = vpop.f32.mrb[3].mxu0  ;;  %1225 = vrot.lane.b32.xlu0 %v5408_v52, %s4773_s3  ;;  %v5415_v58 = vadd.f32 %v1177_v56, %v999_v48 }
 0x325   : > { %1523 = vrot.lane.b32.xlu1 %v1176_v55, %s4774_s12  ;;  %v1180_v60 = vadd.f32 %v1179_v57, %v1003_v50 }
 0x328   : > { %1517 = vrot.lane.b32.xlu0 %v1176_v55, %s4773_s3 }
 0x329   : > { %1227 = vrot.lane.b32.xlu1 %v5415_v58, %s4773_s3 }
 0x32c   : > { %1529 = vrot.lane.b32.xlu0 %v1176_v55, %s4775_s29 }
 0x32d   : > { %1525 = vrot.lane.b32.xlu1 %v1180_v60, %s4774_s12 }
 0x330   : > { %1519 = vrot.lane.b32.xlu0 %v1180_v60, %s4773_s3 }
 0x331   : > { %1531 = vrot.lane.b32.xlu1 %v1180_v60, %s4775_s29 }
 0x334   : > { %1231 = vrot.lane.b32.xlu0 %v5408_v52, %s4774_s12 }
 0x335   : > { %1233 = vrot.lane.b32.xlu1 %v5415_v58, %s4774_s12 }
 0x338   : > { %1237 = vrot.lane.b32.xlu0 %v5408_v52, %s4775_s29 }
 0x339   : > { %1239 = vrot.lane.b32.xlu1 %v5415_v58, %s4775_s29 }
 0x396   : > { %v5444_v1 = vpop.permute.xlu0 %1225 }
 0x397   : > { %v1524_v2 = vpop.permute.xlu1 %1523 }
 0x398   : > { %v1535_v10 = vcombine.low %v1176_v55, %v1524_v2  ;;  %v1536_v11 = vcombine.high %v1176_v55, %v1524_v2 }
 0x39a   : > { %v1518_v6 = vpop.permute.xlu0 %1517  ;;  %v1543_v17 = vrot.slane %v1535_v10, %v5449_v9  ;;  %v1550_v18 = vrot.slane %v1536_v11, %v5449_v9 }
 0x39b   : > { %v5446_v7 = vpop.permute.xlu1 %1227 }
 0x39e   : > { %v1530_v12 = vpop.permute.xlu0 %1529 }
 0x39f   : > { %v1551_v13 = vcombine.low %v1518_v6, %v1530_v12  ;;  %v1552_v14 = vcombine.high %v1518_v6, %v1530_v12  ;;  %v1526_v15 = vpop.permute.xlu1 %1525 }
 0x3a0   : > { %v1603_v22 = vcombine.low %v1180_v60, %v1526_v15  ;;  %v1604_v23 = vcombine.high %v1180_v60, %v1526_v15 }
 0x3a1   : > { %v1559_v19 = vrot.slane %v1551_v13, %v5449_v9  ;;  %v1566_v20 = vrot.slane %v1552_v14, %v5449_v9 }
 0x3a2   : > { %v1520_v24 = vpop.permute.xlu0 %1519  ;;  %v1611_v36 = vrot.slane %v1603_v22, %v5449_v9  ;;  %v1618_v37 = vrot.slane %v1604_v23, %v5449_v9 }
 0x3a3   : > { %v1567_v25 = vcombine.low %v1543_v17, %v1559_v19  ;;  %v1568_v26 = vcombine.high %v1543_v17, %v1559_v19  ;;  %v1583_v27 = vcombine.low %v1550_v18, %v1566_v20  ;;  %v1584_v28 = vcombine.high %v1550_v18, %v1566_v20  ;;  %v1532_v29 = vpop.permute.xlu1 %1531 }
 0x3a4   : > { %v1619_v30 = vcombine.low %v1520_v24, %v1532_v29  ;;  %v1620_v31 = vcombine.high %v1520_v24, %v1532_v29 }
 0x3a5   : > { %v1575_v32 = vrot.slane %v1567_v25, %v5452_v16  ;;  %v1582_v33 = vrot.slane %v1568_v26, %v5452_v16  ;;  %v1591_v34 = vrot.slane %v1583_v27, %v5452_v16  ;;  %v1598_v35 = vrot.slane %v1584_v28, %v5452_v16 }
 0x3a6   : > { %v1627_v38 = vrot.slane %v1619_v30, %v5449_v9  ;;  %v1634_v39 = vrot.slane %v1620_v31, %v5449_v9  ;;  %v1232_v41 = vpop.permute.xlu0 %1231 }
 0x3a7   : > { %v1671_v43 = vcombine.low %v1575_v32, %v1582_v33  ;;  %v3827_v45 = vcombine.high %v1575_v32, %v1582_v33  ;;  %v1687_v48 = vcombine.low %v1591_v34, %v1598_v35  ;;  %v3828_v49 = vcombine.high %v1591_v34, %v1598_v35  ;;  %v1234_v50 = vpop.permute.xlu1 %1233 }
 0x3a8   : > { %v1635_v51 = vcombine.low %v1611_v36, %v1627_v38  ;;  %v1636_v53 = vcombine.high %v1611_v36, %v1627_v38  ;;  %v1651_v54 = vcombine.low %v1618_v37, %v1634_v39  ;;  %v1652_v55 = vcombine.high %v1618_v37, %v1634_v39 }
 0x3a9   : > { %v5467_v56 = vrot.slane %v1671_v43, %v5449_v9  ;;  %v5470_v57 = vrot.slane %v3827_v45, %v5449_v9  ;;  %v5473_v59 = vrot.slane %v1687_v48, %v5449_v9  ;;  %v5476_v60 = vrot.slane %v3828_v49, %v5449_v9 }
 0x3aa   : > { %v1643_v61 = vrot.slane %v1635_v51, %v5452_v16  ;;  %v1650_v62 = vrot.slane %v1636_v53, %v5452_v16  ;;  %v1659_v63 = vrot.slane %v1651_v54, %v5452_v16  ;;  %v1666_v0 = vrot.slane %v1652_v55, %v5452_v16  ;;  %v1238_v12 = vpop.permute.xlu0 %1237 }
 0x3ab   : > { %v1243_v2 = vcombine.low %v5408_v52, %v1232_v41  ;;  %v1244_v3 = vcombine.high %v5408_v52, %v1232_v41  ;;  %v1311_v4 = vcombine.low %v5415_v58, %v1234_v50  ;;  %v1312_v5 = vcombine.high %v5415_v58, %v1234_v50  ;;  %v1240_v13 = vpop.permute.xlu1 %1239 }
 0x3ac   : > { %v1739_v6 = vcombine.low %v1643_v61, %v1650_v62  ;;  %v3829_v8 = vcombine.high %v1643_v61, %v1650_v62  ;;  %v1755_v10 = vcombine.low %v1659_v63, %v1666_v0  ;;  %v3830_v11 = vcombine.high %v1659_v63, %v1666_v0 }
 0x3ad   : > { %v1251_v14 = vrot.slane %v1243_v2, %v5449_v9  ;;  %v1258_v15 = vrot.slane %v1244_v3, %v5449_v9  ;;  %v1259_v19 = vcombine.low %v5444_v1, %v1238_v12  ;;  %v1260_v20 = vcombine.high %v5444_v1, %v1238_v12 }
 0x3ae   : > { %v5489_v17 = vrot.slane %v1739_v6, %v5449_v9  ;;  %v5492_v18 = vrot.slane %v3829_v8, %v5449_v9  ;;  %v5495_v52 = vrot.slane %v1755_v10, %v5449_v9  ;;  %v5498_v58 = vrot.slane %v3830_v11, %v5449_v9 }
 0x3af   : > { %v1327_v22 = vcombine.low %v5446_v7, %v1240_v13  ;;  %v1328_v23 = vcombine.high %v5446_v7, %v1240_v13  ;;  %v1319_v24 = vrot.slane %v1311_v4, %v5449_v9  ;;  %v1326_v25 = vrot.slane %v1312_v5, %v5449_v9 }
 0x3b0   : > { %v1703_v26 = vcombine.low %v5467_v56, %v5470_v57  ;;  %v1719_v27 = vcombine.low %v5473_v59, %v5476_v60  ;;  %v1267_v28 = vrot.slane %v1259_v19, %v5449_v9  ;;  %v1274_v29 = vrot.slane %v1260_v20, %v5449_v9 }
 0x3b1   : > { %v1335_v1 = vrot.slane %v1327_v22, %v5449_v9  ;;  %v1342_v30 = vrot.slane %v1328_v23, %v5449_v9  ;;  %v1771_v32 = vcombine.low %v5489_v17, %v5492_v18  ;;  %v1787_v33 = vcombine.low %v5495_v52, %v5498_v58 }
 0x3b2   : > { %v5515_v7 = vrot.slane %v1703_v26, %v5452_v16  ;;  %v1727_v31 = vrot.slane %v1719_v27, %v5452_v16  ;;  %v1275_v34 = vcombine.low %v1251_v14, %v1267_v28  ;;  %v1276_v35 = vcombine.high %v1251_v14, %v1267_v28 }
 0x3b3   : > { %v1291_v36 = vcombine.low %v1258_v15, %v1274_v29  ;;  %v1292_v37 = vcombine.high %v1258_v15, %v1274_v29  ;;  %v1343_v38 = vcombine.low %v1319_v24, %v1335_v1  ;;  %v1344_v39 = vcombine.high %v1319_v24, %v1335_v1 }
 0x3b4   : > { %v1359_v41 = vcombine.low %v1326_v25, %v1342_v30  ;;  %v1360_v43 = vcombine.high %v1326_v25, %v1342_v30  ;;  %v1283_v45 = vrot.slane %v1275_v34, %v5452_v16  ;;  %v1290_v48 = vrot.slane %v1276_v35, %v5452_v16 }
 0x3b5   : > { %v1299_v49 = vrot.slane %v1291_v36, %v5452_v16  ;;  %v1306_v50 = vrot.slane %v1292_v37, %v5452_v16  ;;  %v1351_v51 = vrot.slane %v1343_v38, %v5452_v16  ;;  %v1358_v53 = vrot.slane %v1344_v39, %v5452_v16 }
 0x3b6   : > { %v1367_v54 = vrot.slane %v1359_v41, %v5452_v16  ;;  %v1374_v55 = vrot.slane %v1360_v43, %v5452_v16  ;;  %v1379_v61 = vcombine.low %v1283_v45, %v1290_v48  ;;  %v3823_v62 = vcombine.high %v1283_v45, %v1290_v48 }
 0x3b7   : > { %v1395_v63 = vcombine.low %v1299_v49, %v1306_v50  ;;  %v3824_v0 = vcombine.high %v1299_v49, %v1306_v50  ;;  %v1447_v2 = vcombine.low %v1351_v51, %v1358_v53  ;;  %v3825_v3 = vcombine.high %v1351_v51, %v1358_v53 }
 0x3b8   : > { %v1463_v4 = vcombine.low %v1367_v54, %v1374_v55  ;;  %v3826_v5 = vcombine.high %v1367_v54, %v1374_v55  ;;  %v1386_v6 = vrot.slane %v1379_v61, %v5449_v9  ;;  %v1394_v8 = vrot.slane %v3823_v62, %v5449_v9 }
 0x3b9   : > { %v1402_v10 = vrot.slane %v1395_v63, %v5449_v9  ;;  %v1410_v11 = vrot.slane %v3824_v0, %v5449_v9  ;;  %v1454_v12 = vrot.slane %v1447_v2, %v5449_v9  ;;  %v1462_v13 = vrot.slane %v3825_v3, %v5449_v9 }
 0x3ba   : > { %v1470_v14 = vrot.slane %v1463_v4, %v5449_v9  ;;  %v1478_v15 = vrot.slane %v3826_v5, %v5449_v9  ;;  %v1411_v19 = vcombine.low %v1386_v6, %v1394_v8  ;;  %v1779_v22 = vrot.slane %v1771_v32, %v5452_v16 }
 0x3bb   : > { %v1427_v20 = vcombine.low %v1402_v10, %v1410_v11  ;;  %v1795_v23 = vrot.slane %v1787_v33, %v5452_v16  ;;  %v1479_v24 = vcombine.low %v1454_v12, %v1462_v13  ;;  %v1735_v1 = vcombine.low %v5515_v7, %v1727_v31 }
 0x3bc   : > { %v1495_v25 = vcombine.low %v1470_v14, %v1478_v15  ;;  %v1419_v26 = vrot.slane %v1411_v19, %v5452_v16  ;;  %v1772_v37 = vcombine.high %v5489_v17, %v5492_v18  ;;  %v1788_v38 = vcombine.high %v5495_v52, %v5498_v58 }
 0x3bd   : > { %v1435_v27 = vrot.slane %v1427_v20, %v5452_v16  ;;  %v1487_v28 = vrot.slane %v1479_v24, %v5452_v16  ;;  %v1803_v30 = vcombine.low %v1779_v22, %v1795_v23  ;;  %v1804_v33 = vcombine.high %v1779_v22, %v1795_v23 }
 0x3be   : > { %v1503_v29 = vrot.slane %v1495_v25, %v5452_v16  ;;  %v1736_v39 = vcombine.high %v5515_v7, %v1727_v31  ;;  %v1704_v41 = vcombine.high %v5467_v56, %v5470_v57  ;;  %v1720_v43 = vcombine.high %v5473_v59, %v5476_v60 }
 0x3bf   : > { %v2103_v34 = vpack.c.bf16 %v1803_v30, %v1735_v1  ;;  %v1443_v35 = vcombine.low %v1419_v26, %v1435_v27  ;;  %v1786_v49 = vrot.slane %v1772_v37, %v5452_v16  ;;  %v1802_v17 = vrot.slane %v1788_v38, %v5452_v16 }
 0x3c0   : > { %v1511_v36 = vcombine.low %v1487_v28, %v1503_v29  ;;  %v2104_v48 = vpack.c.bf16 %v1804_v33, %v1736_v39  ;;  %v1718_v18 = vrot.slane %v1704_v41, %v5452_v16  ;;  %v1734_v52 = vrot.slane %v1720_v43, %v5452_v16 }
 0x3c1   : > { %v2112_v32 = vsel %vm2107_vm3, %v2103_v34, 0  ;;  %v1805_v7 = vcombine.low %v1786_v49, %v1802_v17  ;;  %v1412_v31 = vcombine.high %v1386_v6, %v1394_v8  ;;  %v1428_v56 = vcombine.high %v1402_v10, %v1410_v11 }
 0x3c2   : > { %3996 = vmatpush3.bf16.xpose.msra.mxu1 %v2112_v32  ;;  %v2099_v45 = vpack.c.bf16 %v1511_v36, %v1443_v35  ;;  %v2159_v58 = vsel %vm2107_vm3, %v2104_v48, 0  ;;  %v1480_v57 = vcombine.high %v1454_v12, %v1462_v13  ;;  %v1496_v59 = vcombine.high %v1470_v14, %v1478_v15  ;;  %v1216_v14 = vpop.f32.mrb[0].mxu1 }
 0x3c3   : > { %4001 = vmatprep.subr.bf16.mxu1 %v4772_v40  ;;  %v1444_v60 = vcombine.high %v1419_v26, %v1435_v27  ;;  %v1512_v50 = vcombine.high %v1487_v28, %v1503_v29  ;;  %v1737_v51 = vcombine.low %v1718_v18, %v1734_v52  ;;  %v1426_v54 = vrot.slane %v1412_v31, %v5452_v16  ;;  %v3993_v15 = vpop.f32.mrb[1].mxu1 }
 0x3c4   : > { %v1442_v55 = vrot.slane %v1428_v56, %v5452_v16  ;;  %v1494_v61 = vrot.slane %v1480_v57, %v5452_v16  ;;  %v1510_v62 = vrot.slane %v1496_v59, %v5452_v16  ;;  %v1806_v2 = vcombine.high %v1786_v49, %v1802_v17  ;;  %v1219_v19 = vpop.f32.mrb[2].mxu1 }
 0x3c5   : > { %v2105_v53 = vpack.c.bf16 %v1805_v7, %v1737_v51  ;;  %v2100_v63 = vpack.c.bf16 %v1512_v50, %v1444_v60  ;;  %v1738_v5 = vcombine.high %v1718_v18, %v1734_v52  ;;  %v3994_v20 = vpop.f32.mrb[3].mxu1  ;;  %v1006_v60 = vsub.s32 2, %v5389_v42 }
 0x3c6   : > { %v1445_v3 = vcombine.low %v1426_v54, %v1442_v55  ;;  %v1513_v4 = vcombine.low %v1494_v61, %v1510_v62  ;;  %v1446_v11 = vcombine.high %v1426_v54, %v1442_v55  ;;  %v1514_v12 = vcombine.high %v1494_v61, %v1510_v62 }
 0x3c7   : > { %v2206_v0 = vsel %vm2107_vm3, %v2105_v53, 0  ;;  %v2106_v6 = vpack.c.bf16 %v1806_v2, %v1738_v5  ;;  %v1007_v50 = vrot.slane %v5396_v46, %v1006_v60 }
 0x3c8   : > { %v2101_v8 = vpack.c.bf16 %v1513_v4, %v1445_v3  ;;  %v2102_v13 = vpack.c.bf16 %v1514_v12, %v1446_v11 }
 0x3c9   : > { %3998 = vmatmul.mubr.msk.bf16.vlgmr.msra.gmra.mrb[4].mxu1 %vm2107_vm3, %v2099_v45  ;;  %v2253_v10 = vsel %vm2107_vm3, %v2106_v6, 0  ;;  %v5595_v51 = vadd.f32 %v1216_v14, %v1007_v50  ;;  %v5601_v53 = vadd.f32 %v1219_v19, %v1007_v50 }
 0x3ca   : > { %4002 = vmatpush3.bf16.xpose.msra.mxu1 %v2159_v58  ;;  %4003 = vmatprep.mubr.msk.bf16.mxu1 %vm4776_vm2, %v4772_v40 }
 0x3cb   : > { %4007 = vmatprep.subr.bf16.mxu1 %v4772_v40 }
 0x3d1   : > { %4004 = vmatmul.mubr.msk.bf16.vlgmr.msra.gmra.mrb[8].mxu1 %vm2107_vm3, %v2100_v63 }
 0x3d2   : > { %4008 = vmatpush3.bf16.xpose.msra.mxu1 %v2206_v0  ;;  %4009 = vmatprep.mubr.msk.bf16.mxu1 %vm4776_vm2, %v4772_v40 }
 0x3d3   : > { %4013 = vmatprep.subr.bf16.mxu1 %v4772_v40 }
 0x3d9   : > { %4010 = vmatmul.mubr.msk.bf16.vlgmr.msra.gmra.mrb[12].mxu1 %vm2107_vm3, %v2101_v8 }
 0x3da   : > { %4014 = vmatpush3.bf16.xpose.msra.mxu1 %v2253_v10  ;;  %4015 = vmatprep.mubr.msk.bf16.mxu1 %vm4776_vm2, %v4772_v40 }
 0x3db   : > { %4025 = vmatprep.subr.bf16.mxu1 %v4772_v40 }
 0x3e1   : > { %4016 = vmatmul.mubr.msk.bf16.vlgmr.msra.gmra.mrb[16].mxu1 %vm2107_vm3, %v2102_v13 }
 0x3e2   : > { %4027 = vmatprep.mubr.msk.bf16.mxu1 %vm4776_vm2, %v4772_v40 }
 0x49c   : > { %v2148_v22 = vpop.f32.mrb[4].mxu1 }
 0x49d   : > { %v2296_v23 = vmul.f32 0.17677669, %v2148_v22  ;;  %v3999_v24 = vpop.f32.mrb[5].mxu1 }
 0x49e   : > { %v2151_v25 = vpop.f32.mrb[6].mxu1 }
 0x49f   : > { %v2297_v26 = vmul.f32 0.17677669, %v2151_v25  ;;  %v4000_v27 = vpop.f32.mrb[7].mxu1  ;;  %v2305_v28 = vsel %vm2304_vm4, %v2296_v23, -inf }
 0x4a0   : > { %2306 = vmax.xlane.f32.xlu0 %v2305_v28 }
 0x4a1   : > { %v2308_v29 = vsel %vm2304_vm4, %v2297_v26, -inf }
 0x4a2   : > { %2309 = vmax.xlane.f32.xlu1 %v2308_v29 }
 0x4a4   : > { %v2195_v1 = vpop.f32.mrb[8].mxu1 }
 0x4a5   : > { %v2298_v30 = vmul.f32 0.17677669, %v2195_v1  ;;  %v4005_v34 = vpop.f32.mrb[9].mxu1 }
 0x4a6   : > { %v2198_v35 = vpop.f32.mrb[10].mxu1 }
 0x4a7   : > { %v2299_v36 = vmul.f32 0.17677669, %v2198_v35  ;;  %v4006_v32 = vpop.f32.mrb[11].mxu1  ;;  %v2311_v33 = vsel %vm2304_vm4, %v2298_v30, -inf }
 0x4a8   : > { %2312 = vmax.xlane.f32.xlu0 %v2311_v33 }
 0x4a9   : > { %v2314_v37 = vsel %vm2304_vm4, %v2299_v36, -inf }
 0x4ac   : > { %2315 = vmax.xlane.f32.xlu0 %v2314_v37  ;;  %v2242_v38 = vpop.f32.mrb[12].mxu1 }
 0x4ad   : > { %v2300_v39 = vmul.f32 0.17677669, %v2242_v38  ;;  %v4011_v41 = vpop.f32.mrb[13].mxu1 }
 0x4ae   : > { %v2245_v43 = vpop.f32.mrb[14].mxu1 }
 0x4af   : > { %v5586_v45 = vmul.f32 0.17677669, %v2245_v43  ;;  %v4012_v48 = vpop.f32.mrb[15].mxu1  ;;  %v2317_v49 = vsel %vm2304_vm4, %v2300_v39, -inf }
 0x4b0   : > { %2318 = vmax.xlane.f32.xlu1 %v2317_v49 }
 0x4b1   : > { %v2320_v17 = vsel %vm2304_vm4, %v5586_v45, -inf }
 0x4b2   : > { %2321 = vmax.xlane.f32.xlu0 %v2320_v17 }
 0x4b4   : > { %v2289_v18 = vpop.f32.mrb[16].mxu1 }
 0x4b5   : > { %v2302_v52 = vmul.f32 0.17677669, %v2289_v18  ;;  %v4017_v58 = vpop.f32.mrb[17].mxu1 }
 0x4b6   : > { %v2292_v7 = vpop.f32.mrb[18].mxu1 }
 0x4b7   : > { %v2303_v31 = vmul.f32 0.17677669, %v2292_v7  ;;  %v4018_v56 = vpop.f32.mrb[19].mxu1  ;;  %v2323_v57 = vsel %vm2304_vm4, %v2302_v52, -inf }
 0x4b8   : > { %2324 = vmax.xlane.f32.xlu1 %v2323_v57 }
 0x4b9   : > { %v2326_v59 = vsel %vm2304_vm4, %v2303_v31, -inf }
 0x4ba   : > { %2327 = vmax.xlane.f32.xlu0 %v2326_v59 }
 0x4c9   : > { %1809 = vrot.lane.b32.xlu1 %v5595_v51, %s4773_s3 }
 0x4cd   : > { %1815 = vrot.lane.b32.xlu1 %v5595_v51, %s4774_s12 }
 0x4d0   : > { %1811 = vrot.lane.b32.xlu0 %v5601_v53, %s4773_s3 }
 0x4d1   : > { %1817 = vrot.lane.b32.xlu1 %v5601_v53, %s4774_s12 }
 0x4d4   : > { %1821 = vrot.lane.b32.xlu0 %v5595_v51, %s4775_s29 }
 0x52d   : > { %v2307_v46 = vpop.xlane.xlu0 %2306 }
 0x52e   : > { %v2329_v54 = vsub.f32 %v2296_v23, %v2307_v46 }
 0x52f   : > { %v2310_v55 = vpop.xlane.xlu1 %2309 }
 0x530   : > { %v2337_v61 = vmul.f32 1.442695, %v2329_v54  ;;  %v2330_v62 = vsub.f32 %v2297_v26, %v2310_v55 }
 0x532   : > { %4335 = vpow2.f32 %v2337_v61  ;;  %v2339_v63 = vmul.f32 1.442695, %v2330_v62 }
 0x534   : > { %4337 = vpow2.f32 %v2339_v63 }
 0x535   : > { %v2313_v0 = vpop.xlane.xlu0 %2312 }
 0x536   : > { %v2331_v2 = vsub.f32 %v2298_v30, %v2313_v0 }
 0x538   : > { %v2341_v3 = vmul.f32 1.442695, %v2331_v2 }
 0x539   : > { %v2316_v4 = vpop.xlane.xlu0 %2315 }
 0x53a   : > { %4339 = vpow2.f32 %v2341_v3  ;;  %v2332_v5 = vsub.f32 %v2299_v36, %v2316_v4 }
 0x53c   : > { %v5609_v6 = vpop.eup %4335  ;;  %v2343_v8 = vmul.f32 1.442695, %v2332_v5 }
 0x53d   : > { %v2319_v10 = vpop.xlane.xlu1 %2318  ;;  %v2353_v11 = vsel %vm2304_vm4, %v5609_v6, 0.0 }
 0x53e   : > { %v5613_v12 = vpop.eup %4337  ;;  %4341 = vpow2.f32 %v2343_v8  ;;  %v2333_v13 = vsub.f32 %v2300_v39, %v2319_v10  ;;  %2354 = vadd.xlane.f32.xlu1 %v2353_v11 }
 0x53f   : > { %v2356_v14 = vsel %vm2304_vm4, %v5613_v12, 0.0  ;;  %v2322_v19 = vpop.xlane.xlu0 %2321 }
 0x540   : > { %v2345_v15 = vmul.f32 1.442695, %v2333_v13  ;;  %2357 = vadd.xlane.f32.xlu0 %v2356_v14  ;;  %v2334_v37 = vsub.f32 %v5586_v45, %v2322_v19 }
 0x542   : > { %4343 = vpow2.f32 %v2345_v15  ;;  %v2347_v38 = vmul.f32 1.442695, %v2334_v37 }
 0x544   : > { %v5617_v20 = vpop.eup %4339 }
 0x545   : > { %v2325_v22 = vpop.xlane.xlu1 %2324  ;;  %v2359_v23 = vsel %vm2304_vm4, %v5617_v20, 0.0 }
 0x546   : > { %v2335_v24 = vsub.f32 %v2302_v52, %v2325_v22  ;;  %2360 = vadd.xlane.f32.xlu1 %v2359_v23 }
 0x547   : > { %v2328_v25 = vpop.xlane.xlu0 %2327 }
 0x548   : > { %v5621_v26 = vpop.eup %4341  ;;  %v2349_v27 = vmul.f32 1.442695, %v2335_v24  ;;  %v2336_v28 = vsub.f32 %v2303_v31, %v2328_v25 }
 0x549   : > { %v2362_v29 = vsel %vm2304_vm4, %v5621_v26, 0.0  ;;  %v1810_v48 = vpop.permute.xlu1 %1809 }
 0x54a   : > { %4345 = vpow2.f32 %v2349_v27  ;;  %v2351_v1 = vmul.f32 1.442695, %v2336_v28  ;;  %2363 = vadd.xlane.f32.xlu0 %v2362_v29 }
 0x54b   : > { %v1812_v43 = vpop.permute.xlu0 %1811 }
 0x54c   : > { %v5625_v30 = vpop.eup %4343  ;;  %4347 = vpow2.f32 %v2351_v1 }
 0x54d   : > { %v2365_v34 = vsel %vm2304_vm4, %v5625_v30, 0.0  ;;  %4349 = vpow2.f32 %v2347_v38  ;;  %v1816_v17 = vpop.permute.xlu1 %1815 }
 0x54e   : > { %2366 = vadd.xlane.f32.xlu0 %v2365_v34  ;;  %v1827_v58 = vcombine.low %v5595_v51, %v1816_v17  ;;  %v1828_v7 = vcombine.high %v5595_v51, %v1816_v17 }
 0x54f   : > { %v1822_v49 = vpop.permute.xlu0 %1821 }
 0x550   : > { %v1843_v18 = vcombine.low %v1810_v48, %v1822_v49  ;;  %v1844_v52 = vcombine.high %v1810_v48, %v1822_v49  ;;  %v1835_v57 = vrot.slane %v1827_v58, %v5449_v9  ;;  %v1842_v59 = vrot.slane %v1828_v7, %v5449_v9 }
 0x551   : > { %v1818_v56 = vpop.permute.xlu1 %1817 }
 0x552   : > { %v1851_v45 = vrot.slane %v1843_v18, %v5449_v9  ;;  %v1858_v31 = vrot.slane %v1844_v52, %v5449_v9  ;;  %v1895_v3 = vcombine.low %v5601_v53, %v1818_v56  ;;  %v1896_v4 = vcombine.high %v5601_v53, %v1818_v56 }
 0x554   : > { %v5629_v35 = vpop.eup %4345  ;;  %v1859_v60 = vcombine.low %v1835_v57, %v1851_v45  ;;  %v1860_v50 = vcombine.high %v1835_v57, %v1851_v45  ;;  %v1875_v46 = vcombine.low %v1842_v59, %v1858_v31  ;;  %v1876_v54 = vcombine.high %v1842_v59, %v1858_v31 }
 0x555   : > { %v2371_v36 = vsel %vm2304_vm4, %v5629_v35, 0.0  ;;  %v1903_v22 = vrot.slane %v1895_v3, %v5449_v9  ;;  %v1910_v23 = vrot.slane %v1896_v4, %v5449_v9 }
 0x556   : > { %v5633_v32 = vpop.eup %4347  ;;  %2372 = vadd.xlane.f32.xlu0 %v2371_v36  ;;  %v1867_v61 = vrot.slane %v1859_v60, %v5452_v16  ;;  %v1874_v62 = vrot.slane %v1860_v50, %v5452_v16  ;;  %v1883_v51 = vrot.slane %v1875_v46, %v5452_v16  ;;  %v1890_v63 = vrot.slane %v1876_v54, %v5452_v16 }
 0x557   : > { %1823 = vrot.lane.b32.xlu1 %v5601_v53, %s4775_s29  ;;  %v2374_v33 = vsel %vm2304_vm4, %v5633_v32, 0.0  ;;  %v5640_v39 = vpop.eup %4349 }
 0x558   : > { %v2368_v41 = vsel %vm2304_vm4, %v5640_v39, 0.0  ;;  %v1963_v5 = vcombine.low %v1867_v61, %v1874_v62  ;;  %v3831_v8 = vcombine.high %v1867_v61, %v1874_v62  ;;  %v1979_v10 = vcombine.low %v1883_v51, %v1890_v63 }
 0x559   : > { %v3832_v11 = vcombine.high %v1883_v51, %v1890_v63 }
 0x55a   : > { %2375 = vadd.xlane.f32.xlu0 %v2374_v33  ;;  %v1970_v24 = vrot.slane %v1963_v5, %v5449_v9  ;;  %v1978_v27 = vrot.slane %v3831_v8, %v5449_v9  ;;  %v1986_v28 = vrot.slane %v1979_v10, %v5449_v9 }
 0x55b   : > { %v1994_v29 = vrot.slane %v3832_v11, %v5449_v9 }
 0x55c   : > { %v1995_v49 = vcombine.low %v1970_v24, %v1978_v27  ;;  %v1996_v54 = vcombine.high %v1970_v24, %v1978_v27 }
 0x55d   : > { %v2011_v17 = vcombine.low %v1986_v28, %v1994_v29 }
 0x55e   : > { %v2003_v50 = vrot.slane %v1995_v49, %v5452_v16 }
 0x55f   : > { %v2019_v46 = vrot.slane %v2011_v17, %v5452_v16 }
 0x561   : > { %v2027_v11 = vcombine.low %v2003_v50, %v2019_v46 }
 0x57b   : > { %2369 = vadd.xlane.f32.xlu1 %v2368_v41 }
 0x5cb   : > { %v2355_v55 = vpop.xlane.xlu1 %2354 }
 0x5cc   : > { %4351 = vrcp.f32 %v2355_v55  ;;  %v2012_v55 = vcombine.high %v1986_v28, %v1994_v29 }
 0x5cd   : > { %v2358_v2 = vpop.xlane.xlu0 %2357 }
 0x5ce   : > { %4353 = vrcp.f32 %v2358_v2 }
 0x5d3   : > { %v2361_v0 = vpop.xlane.xlu1 %2360 }
 0x5d6   : > { %v4352_v59 = vpop.eup %4351 }
 0x5d7   : > { %v1824_v13 = vpop.permute.xlu1 %1823  ;;  %v2364_v19 = vpop.xlane.xlu0 %2363 }
 0x5d8   : > { %v1911_v14 = vcombine.low %v1812_v43, %v1824_v13  ;;  %v1912_v15 = vcombine.high %v1812_v43, %v1824_v13  ;;  %4355 = vrcp.f32 %v2364_v19  ;;  %v4354_v61 = vpop.eup %4353  ;;  %v2010_v13 = vrot.slane %v1996_v54, %v5452_v16 }
 0x5d9   : > { %4357 = vrcp.f32 %v2361_v0  ;;  %v2386_v24 = vmul.f32 %v4354_v61, %v5613_v12 }
 0x5da   : > { %v1919_v25 = vrot.slane %v1911_v14, %v5449_v9  ;;  %v1926_v53 = vrot.slane %v1912_v15, %v5449_v9  ;;  %v2026_v14 = vrot.slane %v2012_v55, %v5452_v16 }
 0x5db   : > { %v5668_v48 = vpop.xlane.xlu0 %2366 }
 0x5dc   : > { %v1927_v1 = vcombine.low %v1903_v22, %v1919_v25  ;;  %v1928_v34 = vcombine.high %v1903_v22, %v1919_v25  ;;  %v1943_v36 = vcombine.low %v1910_v23, %v1926_v53  ;;  %v1944_v33 = vcombine.high %v1910_v23, %v1926_v53 }
 0x5dd   : > { %v2028_v22 = vcombine.high %v2003_v50, %v2019_v46 }
 0x5de   : > { %v1935_v37 = vrot.slane %v1927_v1, %v5452_v16  ;;  %v1942_v38 = vrot.slane %v1928_v34, %v5452_v16  ;;  %v1951_v41 = vrot.slane %v1943_v36, %v5452_v16  ;;  %v1958_v43 = vrot.slane %v1944_v33, %v5452_v16 }
 0x5df   : > { %v2385_v1 = vmul.f32 %v4352_v59, %v5609_v6  ;;  %v2029_v36 = vcombine.low %v2010_v13, %v2026_v14  ;;  %v2030_v33 = vcombine.high %v2010_v13, %v2026_v14 }
 0x5e0   : > { %v2031_v18 = vcombine.low %v1935_v37, %v1942_v38  ;;  %v3833_v52 = vcombine.high %v1935_v37, %v1942_v38  ;;  %v2047_v58 = vcombine.low %v1951_v41, %v1958_v43  ;;  %v3834_v7 = vcombine.high %v1951_v41, %v1958_v43 }
 0x5e1   : > { %v2393_v37 = vpack.c.bf16 %v2386_v24, %v2385_v1 }
 0x5e2   : > { %v2038_v45 = vrot.slane %v2031_v18, %v5449_v9  ;;  %v2046_v31 = vrot.slane %v3833_v52, %v5449_v9  ;;  %v2054_v56 = vrot.slane %v2047_v58, %v5449_v9  ;;  %v2062_v57 = vrot.slane %v3834_v7, %v5449_v9  ;;  %v4356_v0 = vpop.eup %4355  ;;  %v4289_v7 = vld [vmem:[%s5357_s6 + $0x10] sm:$0xff]  }
 0x5e3   : > { %v2373_v60 = vpop.xlane.xlu0 %2372  ;;  %v4358_v8 = vpop.eup %4357  ;;  %v2388_v25 = vmul.f32 %v4356_v0, %v5621_v26 }
 0x5e4   : > { %v2063_v62 = vcombine.low %v2038_v45, %v2046_v31  ;;  %v2079_v51 = vcombine.low %v2054_v56, %v2062_v57  ;;  %v2064_v63 = vcombine.high %v2038_v45, %v2046_v31  ;;  %v2080_v2 = vcombine.high %v2054_v56, %v2062_v57  ;;  %v4292_v45 = vld [vmem:[%s5357_s6 + $0x28] sm:$0xff]  }
 0x5e5   : > { %4359 = vrcp.f32 %v2373_v60  ;;  %v2387_v34 = vmul.f32 %v4358_v8, %v5617_v20 }
 0x5e6   : > { %v2071_v3 = vrot.slane %v2063_v62, %v5452_v16  ;;  %v2087_v4 = vrot.slane %v2079_v51, %v5452_v16  ;;  %v2078_v5 = vrot.slane %v2064_v63, %v5452_v16  ;;  %v2094_v15 = vrot.slane %v2080_v2, %v5452_v16 }
 0x5e7   : > { %v2376_v10 = vpop.xlane.xlu0 %2375  ;;  %v2394_v38 = vpack.c.bf16 %v2388_v25, %v2387_v34 }
 0x5e8   : > { %4361 = vrcp.f32 %v2376_v10  ;;  %v2095_v19 = vcombine.low %v2071_v3, %v2087_v4  ;;  %v2096_v23 = vcombine.high %v2071_v3, %v2087_v4  ;;  %v2097_v28 = vcombine.low %v2078_v5, %v2094_v15 }
 0x5e9   : > { %v2098_v29 = vcombine.high %v2078_v5, %v2094_v15  ;;  %4363 = vrcp.f32 %v5668_v48  ;;  %v4288_v48 = vld [vmem:[%s5357_s6 + $0x8] sm:$0xff]  }
 0x5ea   : > { %v2397_v53 = vpack.c.bf16 %v2095_v19, %v2027_v11  ;;  %v2398_v27 = vpack.c.bf16 %v2096_v23, %v2028_v22  ;;  %v2399_v12 = vpack.c.bf16 %v2097_v28, %v2029_v36 }
 0x5eb   : > { %v2400_v26 = vpack.c.bf16 %v2098_v29, %v2030_v33 }
 0x5ec   : > { %4020 = vmatpush3.bf16.msra.mxu0 %v2397_v53  ;;  %4026 = vmatpush3.bf16.msra.mxu1 %v2398_v27 }
 0x5ed   : > { %4031 = vmatprep.subr.bf16.mxu0 %v4772_v40  ;;  %4037 = vmatprep.subr.bf16.mxu1 %v4772_v40 }
 0x5ef   : > { %4022 = vmatmul.mubr.msk.bf16.vlgmr.msra.gmra.mrb[4].mxu0 %vm2304_vm4, %v2393_v37  ;;  %4028 = vmatmul.mubr.msk.bf16.vlgmr.msra.gmra.mrb[20].mxu1 %vm2304_vm4, %v2394_v38  ;;  %v4360_v41 = vpop.eup %4359 }
 0x5f0   : > { %4032 = vmatpush3.bf16.msra.mxu0 %v2399_v12  ;;  %4038 = vmatpush3.bf16.msra.mxu1 %v2400_v26  ;;  %v2391_v20 = vmul.f32 %v4360_v41, %v5629_v35 }
 0x5f1   : > { %4039 = vmatprep.mubr.msk.bf16.mxu1 %vm4776_vm2, %v4772_v40  ;;  %4033 = vmatprep.mubr.msk.bf16.mxu0 %vm4776_vm2, %v4772_v40 }
 0x5f2   : > { %v4362_v6 = vpop.eup %4361  ;;  %4043 = vmatprep.subr.bf16.mxu0 %v4772_v40 }
 0x5f3   : > { %v2392_v43 = vmul.f32 %v4362_v6, %v5633_v32  ;;  %v4364_v18 = vpop.eup %4363 }
 0x5f4   : > { %v2389_v58 = vmul.f32 %v4364_v18, %v5625_v30  ;;  %v4290_v30 = vld [vmem:[%s5357_s6 + $0x18] sm:$0xff]  }
 0x5f5   : > { %v2396_v49 = vpack.c.bf16 %v2392_v43, %v2391_v20 }
 0x5f7   : > { %4040 = vmatmul.mubr.msk.bf16.vlgmr.msra.gmra.mrb[24].mxu1 %vm2304_vm4, %v2396_v49 }
 0x5f8   : > { %3182 = vmatprep.mubr.bf16.mxu1 %v4771_v21  ;;  %v4287_v21 = vld [vmem:[%s5357_s6] sm:$0xff]  }
 0x608   : > { %v2370_v17 = vpop.xlane.xlu1 %2369 }
 0x609   : > { %4365 = vrcp.f32 %v2370_v17 }
 0x613   : > { %v4366_v52 = vpop.eup %4365 }
 0x614   : > { %v2390_v35 = vmul.f32 %v4366_v52, %v5640_v39  ;;  %v4291_v39 = vld [vmem:[%s5357_s6 + $0x20] sm:$0xff]  }
 0x616   : > { %v2395_v32 = vpack.c.bf16 %v2390_v35, %v2389_v58 }
 0x618   : > { %4034 = vmatmul.mubr.msk.bf16.vlgmr.msra.gmra.mrb[8].mxu0 %vm2304_vm4, %v2395_v32 }
 0x619   : > { %4059 = vmatprep.mubr.msk.bf16.mxu0 %vm4776_vm2, %v4772_v40  ;;  %4044 = vmatpush3.bf16.msra.mxu0 %v4287_v21 }
 0x61a   : > { %4045 = vmatprep.subr.bf16.mxu0 %v4772_v40 }
 0x61d   : > { %4046 = vmatpush3.bf16.msra.mxu0 %v4288_v48 }
 0x61e   : > { %4047 = vmatprep.subr.bf16.mxu0 %v4772_v40 }
 0x621   : > { %4048 = vmatpush3.bf16.msra.mxu0 %v4289_v7 }
 0x622   : > { %4049 = vmatprep.subr.bf16.mxu0 %v4772_v40 }
 0x625   : > { %4050 = vmatpush3.bf16.msra.mxu0 %v4290_v30 }
 0x626   : > { %4051 = vmatprep.subr.bf16.mxu0 %v4772_v40 }
 0x629   : > { %4052 = vmatpush3.bf16.msra.mxu0 %v4291_v39 }
 0x62a   : > { %4053 = vmatprep.subr.bf16.mxu0 %v4772_v40 }
 0x62d   : > { %4054 = vmatpush3.bf16.msra.mxu0 %v4292_v45 }
 0x62e   : > { %4055 = vmatprep.subr.bf16.mxu0 %v4772_v40 }
 0x6c2   : > { %v2438_v31 = vpop.f32.mrb[4].mxu0  ;;  %v2482_v56 = vpop.f32.mrb[20].mxu1 }
 0x6c3   : > { %v4023_v57 = vpop.f32.mrb[5].mxu0  ;;  %v4029_v59 = vpop.f32.mrb[21].mxu1 }
 0x6c4   : > { %v2441_v60 = vpop.f32.mrb[6].mxu0  ;;  %v2485_v50 = vpop.f32.mrb[22].mxu1 }
 0x6c5   : > { %v4024_v46 = vpop.f32.mrb[7].mxu0  ;;  %v4030_v54 = vpop.f32.mrb[23].mxu1 }
 0x6c6   : > { %v4293_v46 = vld [vmem:[%s5357_s6 + $0x30] sm:$0xff]  }
 0x6c7   : > { %4056 = vmatpush3.bf16.msra.mxu0 %v4293_v46  ;;  %v4300_v46 = vld [vmem:[%s5359_s13 + $0x14] ss:$8 sps:$4 sm:$0xff]  }
 0x6c8   : > { %4057 = vmatprep.subr.bf16.mxu0 %v4772_v40 }
 0x6ca   : > { %v2570_v55 = vpop.f32.mrb[24].mxu1 }
 0x6cb   : > { %v2593_v61 = vcombine.low %v2482_v56, %v2570_v55  ;;  %v2594_v62 = vcombine.high %v2482_v56, %v2570_v55  ;;  %v4041_v51 = vpop.f32.mrb[25].mxu1 }
 0x6cc   : > { %v2573_v63 = vpop.f32.mrb[26].mxu1 }
 0x6cd   : > { %v2661_v0 = vcombine.low %v2485_v50, %v2573_v63  ;;  %v2662_v2 = vcombine.high %v2485_v50, %v2573_v63  ;;  %v4042_v3 = vpop.f32.mrb[27].mxu1  ;;  %v2601_v11 = vrot.slane %v2593_v61, %v5449_v9  ;;  %v2608_v13 = vrot.slane %v2594_v62, %v5449_v9 }
 0x6cf   : > { %v2669_v29 = vrot.slane %v2661_v0, %v5449_v9  ;;  %v2676_v1 = vrot.slane %v2662_v2, %v5449_v9 }
 0x6eb   : > { %v2526_v4 = vpop.f32.mrb[8].mxu0 }
 0x6ec   : > { %v2577_v5 = vcombine.low %v2438_v31, %v2526_v4  ;;  %v2578_v8 = vcombine.high %v2438_v31, %v2526_v4  ;;  %v4035_v10 = vpop.f32.mrb[9].mxu0 }
 0x6ed   : > { %v2529_v14 = vpop.f32.mrb[10].mxu0 }
 0x6ee   : > { %v2585_v15 = vrot.slane %v2577_v5, %v5449_v9  ;;  %v2592_v19 = vrot.slane %v2578_v8, %v5449_v9  ;;  %v2645_v22 = vcombine.low %v2441_v60, %v2529_v14  ;;  %v2646_v23 = vcombine.high %v2441_v60, %v2529_v14  ;;  %v4036_v24 = vpop.f32.mrb[11].mxu0 }
 0x6f0   : > { %v2609_v25 = vcombine.low %v2585_v15, %v2601_v11  ;;  %v2610_v53 = vcombine.high %v2585_v15, %v2601_v11  ;;  %v2625_v27 = vcombine.low %v2592_v19, %v2608_v13  ;;  %v2626_v28 = vcombine.high %v2592_v19, %v2608_v13 }
 0x6f1   : > { %v2653_v34 = vrot.slane %v2645_v22, %v5449_v9  ;;  %v2660_v36 = vrot.slane %v2646_v23, %v5449_v9  ;;  %v4294_v23 = vld [vmem:[%s5357_s6 + $0x38] sm:$0xff]  }
 0x6f2   : > { %v2617_v33 = vrot.slane %v2609_v25, %v5452_v16  ;;  %v2624_v37 = vrot.slane %v2610_v53, %v5452_v16  ;;  %v2633_v38 = vrot.slane %v2625_v27, %v5452_v16  ;;  %v2640_v12 = vrot.slane %v2626_v28, %v5452_v16  ;;  %4058 = vmatpush3.bf16.msra.mxu0 %v4294_v23 }
 0x6f3   : > { %v2677_v26 = vcombine.low %v2653_v34, %v2669_v29  ;;  %v2678_v41 = vcombine.high %v2653_v34, %v2669_v29  ;;  %v2693_v6 = vcombine.low %v2660_v36, %v2676_v1  ;;  %v2694_v20 = vcombine.high %v2660_v36, %v2676_v1 }
 0x6f4   : > { %v2713_v43 = vcombine.low %v2617_v33, %v2624_v37  ;;  %v3843_v49 = vcombine.high %v2617_v33, %v2624_v37  ;;  %v2729_v17 = vcombine.low %v2633_v38, %v2640_v12  ;;  %v3844_v18 = vcombine.high %v2633_v38, %v2640_v12 }
 0x6f5   : > { %v2685_v52 = vrot.slane %v2677_v26, %v5452_v16  ;;  %v2692_v58 = vrot.slane %v2678_v41, %v5452_v16  ;;  %v2701_v35 = vrot.slane %v2693_v6, %v5452_v16  ;;  %v2708_v32 = vrot.slane %v2694_v20, %v5452_v16 }
 0x6f6   : > { %v2720_v21 = vrot.slane %v2713_v43, %v5449_v9  ;;  %v2728_v48 = vrot.slane %v3843_v49, %v5449_v9  ;;  %v2736_v7 = vrot.slane %v2729_v17, %v5449_v9  ;;  %v2744_v30 = vrot.slane %v3844_v18, %v5449_v9 }
 0x6f7   : > { %v2781_v39 = vcombine.low %v2685_v52, %v2692_v58  ;;  %v3845_v45 = vcombine.high %v2685_v52, %v2692_v58  ;;  %v2797_v31 = vcombine.low %v2701_v35, %v2708_v32  ;;  %v3846_v56 = vcombine.high %v2701_v35, %v2708_v32  ;;  %v4295_v52 = vld [vmem:[%s5359_s13] ss:$8 sps:$4 sm:$0xff]   ;;  %v4297_v58 = vld [vmem:[%s5359_s13 + $0x4] ss:$8 sps:$4 sm:$0xff]   ;;  %v3847_v35 = vld [vmem:[%s841_s21] ss:$0 sm:$0xff]  ;;  %s6041_s21 = scalar_lea.vmem %s6040_s18, %s5319_s19 }
 0x6f8   : > { %v2746_v57 = vcombine.high %v2720_v21, %v2728_v48  ;;  %v2762_v59 = vcombine.high %v2736_v7, %v2744_v30  ;;  %v2745_v60 = vcombine.low %v2720_v21, %v2728_v48  ;;  %v2761_v50 = vcombine.low %v2736_v7, %v2744_v30  ;;  %3150 = vmatprep.subr.bf16.mxu1 %v4297_v58  ;;  %v4383_v30 = vld [vmem:[#allocation2] sm:$0xff] }
 0x6f9   : > { %v2788_v54 = vrot.slane %v2781_v39, %v5449_v9  ;;  %v2796_v55 = vrot.slane %v3845_v45, %v5449_v9  ;;  %v2804_v61 = vrot.slane %v2797_v31, %v5449_v9  ;;  %v2812_v62 = vrot.slane %v3846_v56, %v5449_v9  ;;  %3151 = vmatpush1.bf16.msra.mxu1 %v4295_v52  ;;  %v4384_v56 = vld [vmem:[#allocation2 + $0x8] sm:$0xff]  ;;  %v4324_v52 = vld [vmem:[%s5361_s17 + $0x10] sm:$0xff]   ;;  %v4325_v58 = vld [vmem:[%s5361_s17 + $0x58] sm:$0xff]  }
 0x6fa   : > { %v2760_v51 = vrot.slane %v2746_v57, %v5452_v16  ;;  %v2776_v63 = vrot.slane %v2762_v59, %v5452_v16  ;;  %v2753_v0 = vrot.slane %v2745_v60, %v5452_v16  ;;  %v2769_v2 = vrot.slane %v2761_v50, %v5452_v16  ;;  %v4298_v50 = vld [vmem:[%s5359_s13 + $0x10] ss:$8 sps:$4 sm:$0xff]   ;;  %3152 = vmatprep.subr.bf16.mxu1 %v4300_v46 }
 0x6fb   : > { %v2814_v3 = vcombine.high %v2788_v54, %v2796_v55  ;;  %v2830_v4 = vcombine.high %v2804_v61, %v2812_v62  ;;  %v2813_v5 = vcombine.low %v2788_v54, %v2796_v55  ;;  %v2829_v8 = vcombine.low %v2804_v61, %v2812_v62  ;;  %v4301_v54 = vld [vmem:[%s5359_s13 + $0x20] ss:$8 sps:$4 sm:$0xff]   ;;  %v4303_v55 = vld [vmem:[%s5359_s13 + $0x24] ss:$8 sps:$4 sm:$0xff]   ;;  %v4306_v61 = vld [vmem:[%s5359_s13 + $0x34] ss:$8 sps:$4 sm:$0xff]  }
 0x6fc   : > { %v2779_v10 = vcombine.low %v2760_v51, %v2776_v63  ;;  %v2777_v11 = vcombine.low %v2753_v0, %v2769_v2  ;;  %v2778_v13 = vcombine.high %v2753_v0, %v2769_v2  ;;  %v2780_v9 = vcombine.high %v2760_v51, %v2776_v63  ;;  %v4304_v62 = vld [vmem:[%s5359_s13 + $0x30] ss:$8 sps:$4 sm:$0xff]   ;;  %v4309_v51 = vld [vmem:[%s5359_s13 + $0x44] ss:$8 sps:$4 sm:$0xff]   ;;  %v4307_v63 = vld [vmem:[%s5359_s13 + $0x40] ss:$8 sps:$4 sm:$0xff]  }
 0x6fd   : > { %v2828_v14 = vrot.slane %v2814_v3, %v5452_v16  ;;  %v2844_v15 = vrot.slane %v2830_v4, %v5452_v16  ;;  %v2821_v19 = vrot.slane %v2813_v5, %v5452_v16  ;;  %v2837_v22 = vrot.slane %v2829_v8, %v5452_v16  ;;  %3153 = vmatpush1.bf16.msra.mxu1 %v4298_v50  ;;  %v4312_v0 = vld [vmem:[%s5359_s13 + $0x54] ss:$8 sps:$4 sm:$0xff]   ;;  %v4310_v2 = vld [vmem:[%s5359_s13 + $0x50] ss:$8 sps:$4 sm:$0xff]   ;;  %v4315_v3 = vld [vmem:[%s5359_s13 + $0x64] ss:$8 sps:$4 sm:$0xff]  }
 0x6fe   : > { %3154 = vmatprep.subr.bf16.mxu1 %v4303_v55  ;;  %v4313_v4 = vld [vmem:[%s5359_s13 + $0x60] ss:$8 sps:$4 sm:$0xff]   ;;  %v4318_v5 = vld [vmem:[%s5359_s13 + $0x74] ss:$8 sps:$4 sm:$0xff]   ;;  %v4316_v8 = vld [vmem:[%s5359_s13 + $0x70] ss:$8 sps:$4 sm:$0xff]  }
 0x6ff   : > { %v2847_v24 = vcombine.low %v2828_v14, %v2844_v15  ;;  %v2846_v25 = vcombine.high %v2821_v19, %v2837_v22  ;;  %v2845_v53 = vcombine.low %v2821_v19, %v2837_v22  ;;  %v2848_v27 = vcombine.high %v2828_v14, %v2844_v15  ;;  %s6047_s13 = sld [smem:[#allocation25_spill]] }
 0x701   : > { %v4245_v28 = vpack.i.bf16 %v2847_v24, %v2779_v10  ;;  %v4240_v40 = vpack.i.bf16 %v2846_v25, %v2778_v13  ;;  %v4250_v29 = vpack.i.bf16 %v2848_v27, %v2780_v9  ;;  %3155 = vmatpush1.bf16.msra.mxu1 %v4301_v54 }
 0x702   : > { %3156 = vmatprep.subr.bf16.mxu1 %v4306_v61 }
 0x703   : > { %4246 = vrot.lane.b32.xlu0 %v4245_v28, %s4774_s12  ;;  %4241 = vrot.lane.b32.xlu1 %v4240_v40, %s4775_s29 }
 0x705   : > { %3157 = vmatpush1.bf16.msra.mxu1 %v4304_v62  ;;  %p3893_p13 = scmp.ne.s32.totalorder %s6047_s13, 1 }
 0x706   : > { %3158 = vmatprep.subr.bf16.mxu1 %v4309_v51  ;;  %vm3476_vm7 = vcmask (!%p3893_p13), 1041409  }
 0x707   : > { %4251 = vrot.lane.b32.xlu1 %v4250_v29, %s4773_s3 }
 0x709   : > { %3159 = vmatpush1.bf16.msra.mxu1 %v4307_v63 }
 0x70a   : > { %3160 = vmatprep.subr.bf16.mxu1 %v4312_v0 }
 0x70d   : > { %3161 = vmatpush1.bf16.msra.mxu1 %v4310_v2 }
 0x70e   : > { %3162 = vmatprep.subr.bf16.mxu1 %v4315_v3 }
 0x711   : > { %3163 = vmatpush1.bf16.msra.mxu1 %v4313_v4 }
 0x712   : > { %3164 = vmatprep.subr.bf16.mxu1 %v4318_v5 }
 0x715   : > { %3165 = vmatpush1.bf16.msra.mxu1 %v4316_v8 }
 0x775   : > { %v4247_v1 = vpop.permute.xlu0 %4246  ;;  %v4242_v34 = vpop.permute.xlu1 %4241 }
 0x776   : > { %v4244_v36 = vunpack.i.h.bf16 %v4242_v34  ;;  %v4243_v33 = vunpack.i.l.bf16 %v4242_v34  ;;  %v4249_v16 = vunpack.i.h.bf16 %v4247_v1  ;;  %v4248_v37 = vunpack.i.l.bf16 %v4247_v1  ;;  %v3856_v1 = vld [vmem:[%s6041_s21] ss:$0 sm:$0xff] }
 0x778   : > { %v2873_v38 = vsel %vm2107_vm3, %v2777_v11, %v4243_v33  ;;  %v2874_v12 = vsel %vm2107_vm3, %v2845_v53, %v4244_v36 }
 0x779   : > { %v4252_v26 = vpop.permute.xlu1 %4251  ;;  %v2876_v20 = vsel %vm2875_vm5, %v2873_v38, %v4248_v37  ;;  %v2877_v43 = vsel %vm2875_vm5, %v2874_v12, %v4249_v16  ;;  %v3857_v38 = vld [vmem:[%s6043_s26] ss:$0 sm:$0xff] }
 0x77a   : > { %v4254_v41 = vunpack.i.h.bf16 %v4252_v26  ;;  %v4253_v6 = vunpack.i.l.bf16 %v4252_v26 }
 0x77c   : > { %v2879_v49 = vsel %vm2878_vm6, %v2876_v20, %v4253_v6  ;;  %v2880_v17 = vsel %vm2878_vm6, %v2877_v43, %v4254_v41  ;;  %v4319_v20 = vld [vmem:[%s5361_s17 + $0x40] sm:$0xff]  }
 0x77d   : > { %v2881_v18 = vpack.c.bf16 %v2880_v17, %v2879_v49  ;;  %v4320_v43 = vld [vmem:[%s5361_s17] sm:$0xff]   ;;  %3941 = vmatprep.subr.bf16.mxu0 %v4319_v20  ;;  %v4321_v49 = vld [vmem:[%s5361_s17 + $0x48] sm:$0xff]  }
 0x77e   : > { %v4322_v17 = vld [vmem:[%s5361_s17 + $0x8] sm:$0xff]  }
 0x77f   : > { %4060 = vmatmul.mubr.bf16.vlgmr.msra.gmra.mrb[12].mxu0 %v2881_v18  ;;  %v4323_v18 = vld [vmem:[%s5361_s17 + $0x50] sm:$0xff]  }
 0x780   : > { %3942 = vmatpush3.bf16.msra.mxu0 %v4320_v43 }
 0x781   : > { %3943 = vmatprep.subr.bf16.mxu0 %v4321_v49 }
 0x784   : > { %3944 = vmatpush3.bf16.msra.mxu0 %v4322_v17 }
 0x785   : > { %3945 = vmatprep.subr.bf16.mxu0 %v4323_v18  ;;  %v3874_v18 = vld [vmem:[%s854_s15] ss:$0 sm:$0xff] }
 0x788   : > { %3946 = vmatpush3.bf16.msra.mxu0 %v4324_v52 }
 0x789   : > { %3947 = vmatprep.subr.bf16.mxu0 %v4325_v58 }
 0x852   : > { %v2987_v32 = vpop.f32.mrb[12].mxu0 }
 0x853   : > { %v2988_v21 = vadd.f32 %v3847_v35, %v2987_v32  ;;  %v4061_v48 = vpop.f32.mrb[13].mxu0  ;;  %v4327_v32 = vld [vmem:[%s5361_s17 + $0x60] sm:$0xff]  }
 0x854   : > { %v2990_v7 = vpop.f32.mrb[14].mxu0  ;;  %v4329_v48 = vld [vmem:[%s5361_s17 + $0x68] sm:$0xff]  }
 0x855   : > { %v2994_v39 = vadd.f32 %v4383_v30, %v2988_v21  ;;  %v2991_v45 = vadd.f32 %v3847_v35, %v2990_v7  ;;  %v4062_v31 = vpop.f32.mrb[15].mxu0  ;;  %v4326_v35 = vld [vmem:[%s5361_s17 + $0x18] sm:$0xff]   ;;  %v4328_v21 = vld [vmem:[%s5361_s17 + $0x20] sm:$0xff]   ;;  %v4330_v7 = vld [vmem:[%s5361_s17 + $0x28] sm:$0xff]  }
 0x856   : > { %3948 = vmatpush3.bf16.msra.mxu0 %v4326_v35  ;;  %v4331_v30 = vld [vmem:[%s5361_s17 + $0x70] sm:$0xff]   ;;  %v4334_v31 = vld [vmem:[%s5361_s17 + $0x38] sm:$0xff]  }
 0x857   : > { %v2995_v57 = vadd.f32 %v4384_v56, %v2991_v45  ;;  %2998 = vadd.xlane.f32.xlu1 %v2994_v39  ;;  %v3005_v60 = vmul.f32 %v2994_v39, %v2994_v39  ;;  %3949 = vmatprep.subr.bf16.mxu0 %v4327_v32  ;;  %v4333_v45 = vld [vmem:[%s5361_s17 + $0x78] sm:$0xff]  }
 0x858   : > { %v3058_v56 = vld [vmem:[%s5343_s25] sm:$0x3] }
 0x859   : > { %3000 = vadd.xlane.f32.xlu0 %v2995_v57  ;;  %v3006_v59 = vmul.f32 %v2995_v57, %v2995_v57 }
 0x85a   : > { %3950 = vmatpush3.bf16.msra.mxu0 %v4328_v21 }
 0x85b   : > { %3009 = vadd.xlane.f32.xlu1 %v3006_v59  ;;  %3951 = vmatprep.subr.bf16.mxu0 %v4329_v48  ;;  %v3067_v59 = vrot.slane %v3058_v56, %v1002_v47 }
 0x85d   : > { %3007 = vadd.xlane.f32.xlu0 %v3005_v60 }
 0x85e   : > { %3952 = vmatpush3.bf16.msra.mxu0 %v4330_v7 }
 0x85f   : > { %3953 = vmatprep.subr.bf16.mxu0 %v4331_v30 }
 0x8e4   : > { %v2999_v10 = vpop.xlane.xlu1 %2998 }
 0x8e5   : > { %v3003_v13 = vmul.f32 0.0078125, %v2999_v10 }
 0x8e6   : > { %v3001_v11 = vpop.xlane.xlu0 %3000 }
 0x8e7   : > { %v3004_v9 = vmul.f32 0.0078125, %v3001_v11  ;;  %v3013_v23 = vmul.f32 %v3003_v13, %v3003_v13  ;;  %v3017_v34 = vsub.f32 %v2994_v39, %v3003_v13  ;;  %v4332_v39 = vld [vmem:[%s5361_s17 + $0x30] sm:$0xff]  }
 0x8e8   : > { %v3010_v14 = vpop.xlane.xlu1 %3009  ;;  %3954 = vmatpush3.bf16.msra.mxu0 %v4332_v39 }
 0x8e9   : > { %v3014_v15 = vmul.f32 %v3004_v9, %v3004_v9  ;;  %v3012_v19 = vmul.f32 0.0078125, %v3010_v14  ;;  %v3018_v40 = vsub.f32 %v2995_v57, %v3004_v9  ;;  %3955 = vmatprep.subr.bf16.mxu0 %v4333_v45  ;;  %v3063_v57 = vrot.slane %v3058_v56, %v998_v44 }
 0x8ea   : > { %v3008_v22 = vpop.xlane.xlu0 %3007 }
 0x8eb   : > { %v3016_v24 = vsub.f32 %v3012_v19, %v3014_v15  ;;  %v3011_v25 = vmul.f32 0.0078125, %v3008_v22 }
 0x8ec   : > { %3956 = vmatpush3.bf16.msra.mxu0 %v4334_v31 }
 0x8ed   : > { %v3020_v53 = vadd.f32 1e-05, %v3016_v24  ;;  %v3015_v27 = vsub.f32 %v3011_v25, %v3013_v23 }
 0x8ef   : > { %4367 = vrsqrt.f32 %v3020_v53  ;;  %v3019_v28 = vadd.f32 1e-05, %v3015_v27 }
 0x8f1   : > { %4369 = vrsqrt.f32 %v3019_v28 }
 0x8f9   : > { %v4368_v29 = vpop.eup %4367 }
 0x8fa   : > { %v3024_v36 = vmul.f32 %v4368_v29, %v3018_v40 }
 0x8fb   : > { %v4370_v33 = vpop.eup %4369 }
 0x8fc   : > { %v3023_v16 = vmul.f32 %v4370_v33, %v3017_v34  ;;  %v3032_v37 = vmul.f32 %v3856_v1, %v3024_v36 }
 0x8fe   : > { %v3031_v12 = vmul.f32 %v3856_v1, %v3023_v16  ;;  %v5790_v41 = vadd.f32 %v3857_v38, %v3032_v37 }
 0x900   : > { %v5788_v26 = vadd.f32 %v3857_v38, %v3031_v12 }
 0x902   : > { %v3041_v6 = vpack.c.bf16 %v5790_v41, %v5788_v26 }
 0x904   : > { %3183 = vmatmul.mubr.bf16.vlgmr.msra.gmra.mrb[28].mxu1 %v3041_v6 }
 0x9d7   : > { %v3184_v60 = vpop.f32.mrb[28].mxu1 }
 0x9d8   : > { %v3185_v50 = vadd.f32 %v3184_v60, %v3063_v57  ;;  %v3186_v46 = vpop.f32.mrb[29].mxu1 }
 0x9d9   : > { %v3187_v54 = vadd.f32 %v3186_v46, %v3067_v59  ;;  %v3188_v55 = vpop.f32.mrb[30].mxu1 }
 0x9da   : > { %v3197_v61 = vmul.f32 0.044715, %v3185_v50  ;;  %v3189_v62 = vadd.f32 %v3188_v55, %v3063_v57  ;;  %v3190_v51 = vpop.f32.mrb[31].mxu1  ;;  %v3193_v1 = vmul.f32 0.5, %v3185_v50 }
 0x9db   : > { %v3198_v63 = vmul.f32 0.044715, %v3187_v54  ;;  %v3191_v0 = vadd.f32 %v3190_v51, %v3067_v59  ;;  %v3194_v33 = vmul.f32 0.5, %v3187_v54 }
 0x9dc   : > { %v3201_v2 = vmul.f32 %v3197_v61, %v3185_v50  ;;  %v3199_v3 = vmul.f32 0.044715, %v3189_v62  ;;  %v3195_v34 = vmul.f32 0.5, %v3189_v62 }
 0x9dd   : > { %v3202_v4 = vmul.f32 %v3198_v63, %v3187_v54  ;;  %v3200_v5 = vmul.f32 0.044715, %v3191_v0  ;;  %v3196_v16 = vmul.f32 0.5, %v3191_v0 }
 0x9de   : > { %v3205_v8 = vmul.f32 %v3201_v2, %v3185_v50  ;;  %v3203_v10 = vmul.f32 %v3199_v3, %v3189_v62  ;;  %v3891_v3 = vld [vmem:[%s857_s0] ss:$0 sm:$0xff] }
 0x9df   : > { %v3206_v44 = vmul.f32 %v3202_v4, %v3187_v54  ;;  %v3204_v11 = vmul.f32 %v3200_v5, %v3191_v0 }
 0x9e0   : > { %v3209_v42 = vadd.f32 %v3205_v8, %v3185_v50  ;;  %v3207_v47 = vmul.f32 %v3203_v10, %v3189_v62  ;;  %v3892_v10 = vld [vmem:[%s860_s10] ss:$0 sm:$0xff] }
 0x9e1   : > { %v3208_v13 = vmul.f32 %v3204_v11, %v3191_v0  ;;  %v3210_v9 = vadd.f32 %v3206_v44, %v3187_v54 }
 0x9e2   : > { %v3213_v14 = vmul.f32 0.7978846, %v3209_v42  ;;  %v3211_v15 = vadd.f32 %v3207_v47, %v3189_v62 }
 0x9e3   : > { %v3212_v19 = vadd.f32 %v3208_v13, %v3191_v0  ;;  %v3214_v22 = vmul.f32 0.7978846, %v3210_v9 }
 0x9e4   : > { %4371 = vtanh.f32 %v3213_v14  ;;  %v3215_v23 = vmul.f32 0.7978846, %v3211_v15 }
 0x9e5   : > { %v3216_v24 = vmul.f32 0.7978846, %v3212_v19  ;;  %4373 = vtanh.f32 %v3214_v22 }
 0x9e6   : > { %4375 = vtanh.f32 %v3215_v23 }
 0x9e7   : > { %4377 = vtanh.f32 %v3216_v24 }
 0x9ee   : > { %v4372_v25 = vpop.eup %4371 }
 0x9ef   : > { %v4374_v53 = vpop.eup %4373  ;;  %v3221_v27 = vadd.f32 1.0, %v4372_v25 }
 0x9f0   : > { %v4376_v28 = vpop.eup %4375  ;;  %v3222_v40 = vadd.f32 1.0, %v4374_v53 }
 0x9f1   : > { %v4378_v29 = vpop.eup %4377  ;;  %v3223_v36 = vadd.f32 1.0, %v4376_v28  ;;  %v3225_v38 = vmul.f32 %v3221_v27, %v3193_v1 }
 0x9f2   : > { %v3224_v37 = vadd.f32 1.0, %v4378_v29  ;;  %v3226_v6 = vmul.f32 %v3222_v40, %v3194_v33 }
 0x9f3   : > { %v3227_v12 = vmul.f32 %v3223_v36, %v3195_v34 }
 0x9f4   : > { %v3228_v20 = vmul.f32 %v3224_v37, %v3196_v16 }
 0x9f5   : > { %v3229_v43 = vpack.c.bf16 %v3227_v12, %v3225_v38 }
 0x9f6   : > { %v3230_v49 = vpack.c.bf16 %v3228_v20, %v3226_v6 }
 0x9f8   : > { %3398 = vmatprep.mubr.bf16.mxu0 %v3230_v49 }
 0x9f9   : > { %3399 = vmatmul.mubr.bf16.vlgmr.msra.gmra.mrb[16].mxu0 %v3229_v43 }
 0xacc   : > { %v3957_v17 = vpop.f32.mrb[16].mxu0 }
 0xacd   : > { %v3958_v52 = vpop.f32.mrb[17].mxu0 }
 0xace   : > { %v3959_v58 = vadd.f32 %v3958_v52, %v3957_v17  ;;  %v3960_v35 = vpop.f32.mrb[18].mxu0 }
 0xacf   : > { %v3961_v32 = vpop.f32.mrb[19].mxu0 }
 0xad0   : > { %v3401_v21 = vadd.f32 %v3959_v58, %v3874_v18  ;;  %v3962_v48 = vadd.f32 %v3961_v32, %v3960_v35 }
 0xad2   : > { %v3404_v7 = vadd.f32 %v3962_v48, %v3874_v18  ;;  %v3407_v30 = vadd.f32 %v3401_v21, %v5788_v26 }
 0xad4   : > { %3411 = vadd.xlane.f32.xlu0 %v3407_v30  ;;  %v3408_v39 = vadd.f32 %v3404_v7, %v5790_v41  ;;  %v3417_v45 = vmul.f32 %v3407_v30, %v3407_v30 }
 0xad6   : > { %3413 = vadd.xlane.f32.xlu1 %v3408_v39  ;;  %v3418_v31 = vmul.f32 %v3408_v39, %v3408_v39 }
 0xad8   : > { %3419 = vadd.xlane.f32.xlu0 %v3417_v45 }
 0xada   : > { %3421 = vadd.xlane.f32.xlu1 %v3418_v31 }
 0xb61   : > { %v3412_v56 = vpop.xlane.xlu0 %3411 }
 0xb62   : > { %v3415_v57 = vmul.f32 0.0078125, %v3412_v56 }
 0xb63   : > { %v3414_v59 = vpop.xlane.xlu1 %3413 }
 0xb64   : > { %v3416_v60 = vmul.f32 0.0078125, %v3414_v59  ;;  %v3425_v46 = vmul.f32 %v3415_v57, %v3415_v57  ;;  %v3429_v0 = vsub.f32 %v3407_v30, %v3415_v57 }
 0xb65   : > { %v3420_v50 = vpop.xlane.xlu0 %3419 }
 0xb66   : > { %v3423_v54 = vmul.f32 0.0078125, %v3420_v50  ;;  %v3426_v61 = vmul.f32 %v3416_v60, %v3416_v60  ;;  %v3430_v4 = vsub.f32 %v3408_v39, %v3416_v60 }
 0xb67   : > { %v3422_v55 = vpop.xlane.xlu1 %3421 }
 0xb68   : > { %v3427_v26 = vsub.f32 %v3423_v54, %v3425_v46  ;;  %v3424_v62 = vmul.f32 0.0078125, %v3422_v55 }
 0xb6a   : > { %v3431_v51 = vadd.f32 1e-05, %v3427_v26  ;;  %v3428_v41 = vsub.f32 %v3424_v62, %v3426_v61 }
 0xb6c   : > { %4379 = vrsqrt.f32 %v3431_v51  ;;  %v3432_v63 = vadd.f32 1e-05, %v3428_v41 }
 0xb6e   : > { %4381 = vrsqrt.f32 %v3432_v63 }
 0xb76   : > { %v4380_v2 = vpop.eup %4379 }
 0xb77   : > { %v3435_v5 = vmul.f32 %v4380_v2, %v3429_v0 }
 0xb78   : > { %v4382_v8 = vpop.eup %4381 }
 0xb79   : > { %v3443_v44 = vmul.f32 %v3891_v3, %v3435_v5  ;;  %v3436_v11 = vmul.f32 %v4382_v8, %v3430_v4  ;;  %3458 = sbr.rel (%p3893_p13) target bundleno = 2959 (0xb8f), region = 124 }
 0xb7b   : > { %v3451_v42 = vadd.f32 %v3892_v10, %v3443_v44  ;;  %v3444_v47 = vmul.f32 %v3891_v3, %v3436_v11 }
 0xb7d   : > { %3453 = vst [vmem:[#allocation2] sm:$0xff] %v3451_v42  ;;  %v3452_v13 = vadd.f32 %v3892_v10, %v3444_v47  ;;  %v3459_v9 = vrot.slane (!%p3893_p13), %v3451_v42, 4 }
 0xb7f   : > { %3454 = vst [vmem:[#allocation2 + $0x8] sm:$0xff] %v3452_v13  ;;  %v3465_v14 = vrot.slane (!%p3893_p13), %v3452_v13, 4  ;;  %v3460_v15 = vadd.f32 (!%p3893_p13), %v3459_v9, %v3451_v42 }
 0xb81   : > { %v3466_v19 = vadd.f32 %v3465_v14, %v3452_v13  ;;  %v3461_v22 = vrot.slane %v3460_v15, 2 }
 0xb83   : > { %v3467_v23 = vrot.slane %v3466_v19, 2  ;;  %v3462_v24 = vadd.f32 %v3461_v22, %v3460_v15 }
 0xb85   : > { %v3468_v25 = vadd.f32 %v3467_v23, %v3466_v19  ;;  %v3463_v53 = vrot.slane %v3462_v24, 1 }
 0xb87   : > { %v3469_v27 = vrot.slane %v3468_v25, 1  ;;  %v3464_v28 = vadd.f32 %v3463_v53, %v3462_v24 }
 0xb89   : > { %v3470_v40 = vadd.f32 %v3469_v27, %v3468_v25  ;;  %v3472_v29 = vmul.f32 0.125, %v3464_v28 }
 0xb8b   : > { %v3473_v1 = vmul.f32 0.125, %v3470_v40 }
 0xb8d   : > { %v3477_v34 = vsel %vm3476_vm7, %v3473_v1, %v3472_v29 }
 0xb8e   : > { %3479 = vst [vmem:[%s5363_s2] sm:$0x3] %v3477_v34 }
 0xb8f PF: > { %s6048_s19 = sld [smem:[#allocation26_spill]]  ;;  %s6049_s0 = sld [smem:[#allocation35_spill]] }
 0xb90   : > { %s6050_s12 = sld [smem:[#allocation53_spill]]  ;;  %s3494_s27 = sshll.u32 %s5363_s2, 4  ;;  %s3495_s27 = int_to_ptr.vmem [resolvable:$true] %s3494_s27 }
 0xb91   : > { %s3481_s11 = scalar_lea.sflag [#allocation5], %s5292_s28  ;;  %s4619_s4 = scalar_lea.vmem %s3495_s27, 32 }
 0xb92   : > { %p4620_p5 = scmp.ne.s32.totalorder %s3495_s27, %s4619_s4  ;;  %s4779_s24 = smov [#allocation15]  }
 0xb93   : > { %s4623_s7 = sshll.u32 %s4779_s24, 4  ;;  %s4624_s7 = int_to_ptr.vmem [resolvable:$false] %s4623_s7 }
 0xb94   : > { %s4625_s18 = scalar_lea.vmem %s4624_s7, 64  ;;  %p4626_p12 = scmp.lt.s32.totalorder %s3495_s27, %s4624_s7 }
 0xb95   : > { %s3895_s10 = sshll.u32 %s6048_s19, 5  ;;  %p6051_p9 = scmp.ne.s32.totalorder %s6049_s0, 0 }
 0xb96   : > { %s5838_s29 = scalar_lea.hbm %s6050_s12, %s3895_s10  ;;  %p4627_p1 = scmp.lt.s32.totalorder %s4625_s18, %s4619_s4 }
 0xb97   : > { %p4621_p3 = pnand %p4620_p5, %p6051_p9 }
 0xb98   : > { %p4628_p8 = por %p4627_p1, %p4626_p12 }
 0xb99   : > { %p4622_p0 = pneg %p4621_p3 }
 0xb9b   : > { %p4629_p6 = pnand %p4628_p8, %p4622_p0 }
 0xb9d   : > { %4632 = shalt.err (!%p4629_p6)
}
 0xb9e   : > { %s4633_s28 = scalar_lea.hbm %s5838_s29, 32  ;;  %s4637_s30 = scalar_lea.hbm %s6050_s12, 64 }
 0xb9f   : > { %p4634_p10 = scmp.ne.s32.totalorder %s5838_s29, %s4633_s28  ;;  %p4638_p4 = scmp.lt.u32.totalorder %s5838_s29, %s6050_s12 }
 0xba0   : > { %p4639_p7 = scmp.lt.u32.totalorder %s4637_s30, %s4633_s28  ;;  %p4641_p5 = scmp.lt.u32.totalorder %s4633_s28, %s5838_s29 }
 0xba1   : > { %p4635_p11 = pnand %p4634_p10, %p6051_p9 }
 0xba2   : > { %p4640_p13 = por %p4639_p7, %p4638_p4 }
 0xba3   : > { %p4636_p2 = pneg %p4635_p11 }
 0xba4   : > { %p4642_p3 = por %p4641_p5, %p4640_p13 }
 0xba6   : > { %p4643_p0 = pnand %p4642_p3, %p4636_p2 }
 0xba8   : > { %4646 = shalt.err (!%p4643_p0)
}
 0xba9   : > { %4089 = dma.vmem_to_hbm [thread:$0]  (%p6051_p9), %s3495_s27, 32, %s5838_s29, %s3481_s11  }
 0xbaa PF: > { %s6052_s26 = sld [smem:[#allocation29_spill]]  ;;  %s6053_s25 = sld [smem:[#allocation22_spill]] }
 0xbab   : > { %s6054_s16 = sld [smem:[#allocation36_spill]] }
 0xbb0   : > { %p4128_p12 = scmp.ge.s32.totalorder %s6052_s26, 2  ;;  %s3506_s14 = sand.u32 1, %s6053_s25  }
 0xbb1   : > { %p6055_p1 = scmp.ne.s32.totalorder %s6054_s16, 0  ;;  %s3507_s15 = scalar_lea.sflag [#allocation5], %s3506_s14 }
 0xbb3   : > { %p4118_p8 = pnand %p4128_p12, %p6055_p1 }
 0xbb5   : > { %4708 = dma.done.wait (!%p4118_p8), %s3507_s15, 32  }
 0xbb6   : > { %4710 = vsyncadd (!%p4118_p8), %s3507_s15, 4294967264  ;;  %s34_s0 = sadd.s32 1, %s6052_s26   ;;  %s6056_s23 = sld [smem:[#allocation21_spill]] }
 0xbb7   : > { %p31_p6 = scmp.ge.s32.totalorder %s34_s0, 6   ;;  %s6057_s9 = sld [smem:[#allocation33_spill]] }
 0xbb8   : > { %s6058_s24 = sld [smem:[#allocation23_spill]]  ;;  %s6059_s25 = sld [smem:[#allocation24_spill]] }
 0xbb9   : > { %s6060_s26 = sld [smem:[#allocation32_spill]]  ;;  %s6061_s27 = sld [smem:[#allocation27_spill]] }
 0xbba   : > { %s6062_s28 = sld [smem:[#allocation28_spill]]  ;;  %s6063_s29 = sld [smem:[#allocation30_spill]] }
 0xbbb   : > { %s6064_s30 = sld [smem:[#allocation31_spill]]  ;;  %s6065_s21 = smov %s4717_s22 }
 0xbbc   : > { %s6066_s22 = smov %s6056_s23  ;;  %33 = sbr.rel (!%p31_p6) target bundleno = 29 (0x1d), region = 217 }
 0xbbd   : > { %s6067_s23 = smov %s6057_s9 }
 0xbc3   :  { %3512 = vsyncpa [#allocation4], 1 }
 0xbc4   :  { %3514 = vsyncpa [#allocation4 + $0x1], 1 }
 0xbc5   :  { %3515 = vsyncpa [#allocation7], 1 }
 0xbc6   :  { %3516 = vsyncpa [#allocation10], 1 }
 0xbc7   :  { %3517 = vsyncpa [#allocation5], 1 }
 0xbc8   :  { %3519 = vsyncpa [#allocation5 + $0x1], 1 }

</bundles_post_ra>
